<compile_context>
chip_gen: v6e
topology: v6e:2x2x1
jax: 0.10.0
libtpu: 0.0.40
codegen_flags: <defaults>
</compile_context>

<pallas_src>
import functools
import math

import numpy as np

import jax
import jax.numpy as jnp
from jax.experimental import pallas as pl
from jax.experimental.pallas import tpu as pltpu

D_PAD = 128  # lane-dense internal feature width


def _round_up(v, m):
    return ((v + m - 1) // m) * m


# --------------------------------------------------------------------------
# Kernel A: edge MLP, 1-D grid over (dst-sorted) edge tiles.  Runs once per
# edge tile; three lane-aligned bf16 matmuls + f32 bias + ReLU.
# --------------------------------------------------------------------------
def _edge_mlp_kernel(xsrc_ref, xdst_ref, e_ref,
                     wsrc_ref, wdst_ref, wee_ref, be_ref, eout_ref):
    h = (jnp.dot(xsrc_ref[...], wsrc_ref[...], preferred_element_type=jnp.float32)
         + jnp.dot(xdst_ref[...], wdst_ref[...], preferred_element_type=jnp.float32)
         + jnp.dot(e_ref[...], wee_ref[...], preferred_element_type=jnp.float32)
         + be_ref[...])
    eout_ref[...] = jnp.maximum(h, 0.0).astype(eout_ref.dtype)


def _edge_mlp(xsrc, xdst, e_s, params, te, d_pad):
    e_pad = e_s.shape[0]
    grid = (e_pad // te,)
    edge_spec = pl.BlockSpec((te, d_pad), lambda i: (i, 0))
    w_spec = pl.BlockSpec((d_pad, d_pad), lambda i: (0, 0))
    b_spec = pl.BlockSpec((1, d_pad), lambda i: (0, 0))
    return pl.pallas_call(
        _edge_mlp_kernel,
        out_shape=jax.ShapeDtypeStruct((e_pad, d_pad), jnp.bfloat16),
        grid_spec=pltpu.PrefetchScalarGridSpec(
            num_scalar_prefetch=0,
            grid=grid,
            in_specs=[edge_spec, edge_spec, edge_spec,
                      w_spec, w_spec, w_spec, b_spec],
            out_specs=edge_spec,
        ),
        compiler_params=pltpu.CompilerParams(
            dimension_semantics=("parallel",),
            vmem_limit_bytes=32 * 1024 * 1024,
        ),
    )(xsrc, xdst, e_s,
      params["we_src"], params["we_dst"], params["we_e"], params["be"])


# --------------------------------------------------------------------------
# Kernel B: scatter-add aggregation + node MLP + residual.
# Grid = (node tiles ["parallel"], chunks of dst-sorted edge tiles ["arbitrary"]).
# The chunk table (which edge tile to load for (node tile i, chunk j)) and the
# per-node-tile chunk counts are scalar-prefetched into SMEM.
# --------------------------------------------------------------------------
def _agg_node_kernel(alpha,
                     ct_ref, cnt_ref,                     # scalar prefetch
                     x_ref, enew_ref, dst_ref,
                     wnx_ref, wna_ref, bn_ref,
                     xout_ref, acc_ref):
    i = pl.program_id(0)
    j = pl.program_id(1)
    tn = x_ref.shape[0]
    te = dst_ref.shape[1]

    @pl.when(j == 0)
    def _init():
        acc_ref[...] = jnp.zeros_like(acc_ref)

    # Only chunks that actually overlap this node tile contribute.
    @pl.when(j < cnt_ref[i])
    def _accumulate():
        # One-hot mask built in VMEM from the sorted dst indices of this tile:
        # onehot[r, c] = 1 iff dst_sorted[c] == global node row (i*tn + r).
        rows = i * tn + jax.lax.broadcasted_iota(jnp.int32, (tn, te), 0)
        onehot = jnp.where(rows == dst_ref[...], 1.0, 0.0).astype(jnp.bfloat16)
        acc_ref[...] += jnp.dot(onehot, enew_ref[...],
                                preferred_element_type=jnp.float32)

    # Node MLP + residual only once all chunks have been accumulated.
    @pl.when(j == pl.num_programs(1) - 1)
    def _finalize():
        x = x_ref[...].astype(jnp.float32)
        x_new = (jnp.dot(x, wnx_ref[...], preferred_element_type=jnp.float32)
                 + jnp.dot(acc_ref[...], wna_ref[...],
                           preferred_element_type=jnp.float32)
                 + bn_ref[...])
        x_new = jnp.maximum(x_new, 0.0)
        xout_ref[...] = (alpha * x + (1.0 - alpha) * x_new).astype(xout_ref.dtype)


def _node_update(x_p, e_new_s, dst2d, tables, params, alpha, tn, te, d_pad):
    n_pad = x_p.shape[0]
    n_tiles = n_pad // tn
    mc = tables["max_chunks"]

    def nmap(i, j, ct, cnt):
        return (i, 0)

    def emap(i, j, ct, cnt):
        return (ct[i * mc + j], 0)

    def dmap(i, j, ct, cnt):
        return (0, ct[i * mc + j])

    def wmap(i, j, ct, cnt):
        return (0, 0)

    return pl.pallas_call(
        functools.partial(_agg_node_kernel, float(alpha)),
        out_shape=jax.ShapeDtypeStruct((n_pad, d_pad), jnp.bfloat16),
        grid_spec=pltpu.PrefetchScalarGridSpec(
            num_scalar_prefetch=2,
            grid=(n_tiles, mc),
            in_specs=[
                pl.BlockSpec((tn, d_pad), nmap),      # x (bf16)
                pl.BlockSpec((te, d_pad), emap),      # e_new, dst-sorted (bf16)
                pl.BlockSpec((1, te), dmap),          # dst indices (int32)
                pl.BlockSpec((d_pad, d_pad), wmap),   # wnx (f32)
                pl.BlockSpec((d_pad, d_pad), wmap),   # wna (f32)
                pl.BlockSpec((1, d_pad), wmap),       # bn (f32)
            ],
            out_specs=pl.BlockSpec((tn, d_pad), nmap),
            scratch_shapes=[pltpu.VMEM((tn, d_pad), jnp.float32)],
        ),
        compiler_params=pltpu.CompilerParams(
            dimension_semantics=("parallel", "arbitrary"),
            vmem_limit_bytes=32 * 1024 * 1024,
        ),
    )(tables["chunk_tile"], tables["chunk_cnt"],
      x_p, e_new_s, dst2d,
      params["wnx"], params["wna"], params["bn"])


# --------------------------------------------------------------------------
# Host-side graph preprocessing: dst-sort, per-node-tile chunk tables.
# (Graph structure is static across layers, so this runs once per forward.)
# --------------------------------------------------------------------------
def _build_tables(edge_index, n, e, n_pad, e_pad, tn, te):
    ei = np.asarray(jax.device_get(edge_index)).astype(np.int64)
    src, dst = ei[0], ei[1]

    dst_full = np.full((e_pad,), n_pad, dtype=np.int64)   # sentinel for padding
    dst_full[:e] = dst
    src_full = np.zeros((e_pad,), dtype=np.int64)
    src_full[:e] = src

    perm = np.argsort(dst_full, kind="stable")             # dst-sorted edge order
    inv = np.argsort(perm, kind="stable")                  # sorted pos of edge k
    dst_s = dst_full[perm]
    src_s = src_full[perm]

    n_tiles = n_pad // tn
    e_tiles = e_pad // te
    bounds = np.searchsorted(dst_s, np.arange(n_tiles + 1) * tn, side="left")
    starts, ends = bounds[:-1], bounds[1:]
    cnt = np.where(ends > starts,
                   (ends - 1) // te - starts // te + 1, 0).astype(np.int32)
    max_chunks = int(max(1, cnt.max()))
    first = np.where(ends > starts, starts // te, 0)
    chunk_tile = np.minimum(first[:, None] + np.arange(max_chunks)[None, :],
                            e_tiles - 1).astype(np.int32)

    return dict(
        perm=jnp.asarray(perm, jnp.int32),
        inv=jnp.asarray(inv, jnp.int32),
        src_s=jnp.asarray(src_s, jnp.int32),
        dst_gather=jnp.asarray(np.minimum(dst_s, n_pad - 1), jnp.int32),
        dst_sorted_2d=jnp.asarray(dst_s, jnp.int32).reshape(1, e_pad),
        chunk_tile=jnp.asarray(chunk_tile.reshape(-1), jnp.int32),
        chunk_cnt=jnp.asarray(cnt, jnp.int32),
        max_chunks=max_chunks,
    )


def _pad_layer_params(p, d_node, d_edge, d_pad):
    """Split We into three lane-aligned blocks and zero-pad everything to 128."""
    def pad(a, r, c):
        return jnp.pad(a, ((0, r - a.shape[0]), (0, c - a.shape[1])))

    we = p["we"]
    return {
        # Edge MLP: bf16 weights (MXU peak dtype).
        "we_src": pad(we[:d_node], d_pad, d_pad).astype(jnp.bfloat16),
        "we_dst": pad(we[d_node:2 * d_node], d_pad, d_pad).astype(jnp.bfloat16),
        "we_e": pad(we[2 * d_node:], d_pad, d_pad).astype(jnp.bfloat16),
        "be": pad(p["be"], 1, d_pad),                       # f32
        # Node MLP (tiny, runs once per node tile): keep f32 for accuracy.
        "wnx": pad(p["wnx"], d_pad, d_pad),
        "wna": pad(p["wna"], d_pad, d_pad),
        "bn": pad(p["bn"], 1, d_pad),
    }


def _unsort_edges(e_s, inv, e, d_edge):
    return jnp.take(e_s, inv[:e], axis=0)[:, :d_edge].astype(jnp.float32)


def residual_network_forward(x, edge_index, edge_attr, layer_params, *,
                             alpha=0.5, collect_hidden_edge_embeds=True,
                             tn=256, te=512, d_pad=D_PAD):
    """JAX/Pallas equivalent of ResidualNetwork.forward (IN-style layers)."""
    n, d_node = x.shape
    e, d_edge = edge_attr.shape
    assert d_node <= d_pad and d_edge <= d_pad

    tn = min(tn, _round_up(max(n, 8), 128))
    te = min(te, _round_up(max(e, 8), 128))
    n_pad = _round_up(max(n, 8), tn)
    e_pad = _round_up(max(e, 8), te)

    tables = _build_tables(edge_index, n, e, n_pad, e_pad, tn, te)

    # bf16 activations, lane-padded to 128 (padding lanes stay exactly zero).
    x_p = jnp.pad(x.astype(jnp.float32),
                  ((0, n_pad - n), (0, d_pad - d_node))).astype(jnp.bfloat16)
    e_full = jnp.pad(edge_attr.astype(jnp.float32),
                     ((0, e_pad - e), (0, d_pad - d_edge)))
    e_s = jnp.take(e_full, tables["perm"], axis=0).astype(jnp.bfloat16)

    padded_params = [_pad_layer_params(p, d_node, d_edge, d_pad)
                     for p in layer_params]

    edge_attrs = ([edge_attr.astype(jnp.float32)]
                  if collect_hidden_edge_embeds else None)

    for p in padded_params:
        # TODO(synk): in-kernel DMA gather of x[src]/x[dst] to avoid these
        # XLA gathers materializing E x 128 bf16 arrays in HBM each layer.
        xsrc = jnp.take(x_p, tables["src_s"], axis=0)
        xdst = jnp.take(x_p, tables["dst_gather"], axis=0)

        e_s = _edge_mlp(xsrc, xdst, e_s, p, te, d_pad)
        x_p = _node_update(x_p, e_s, tables["dst_sorted_2d"], tables, p,
                           alpha, tn, te, d_pad)
        if collect_hidden_edge_embeds:
            edge_attrs.append(_unsort_edges(e_s, tables["inv"], e, d_edge))

    x_out = x_p[:n, :d_node].astype(jnp.float32)
    e_out = _unsort_edges(e_s, tables["inv"], e, d_edge)
    return x_out, e_out, edge_attrs


# --------------------------------------------------------------------------
# Pure-JAX reference + parameter init + test harness
# --------------------------------------------------------------------------
def _reference_forward(x, edge_index, edge_attr, layer_params, alpha):
    src, dst = edge_index[0], edge_index[1]
    n = x.shape[0]
    for p in layer_params:
        edge_in = jnp.concatenate([x[src], x[dst], edge_attr], axis=-1)
        e_new = jnp.maximum(edge_in @ p["we"] + p["be"], 0.0)
        agg = jnp.zeros((n, e_new.shape[-1]), jnp.float32).at[dst].add(e_new)
        x_new = jnp.maximum(x @ p["wnx"] + agg @ p["wna"] + p["bn"], 0.0)
        x = alpha * x + (1.0 - alpha) * x_new
        edge_attr = e_new
    return x, edge_attr


def init_layer_params(key, num_layers, d_node, d_edge):
    params = []
    for i in range(num_layers):
        k = jax.random.fold_in(key, i)
        k1, k2, k3 = jax.random.split(k, 3)
        s_e = 1.0 / math.sqrt(2 * d_node + d_edge)
        s_n = 1.0 / math.sqrt(d_node + d_edge)
        params.append({
            "we": jax.random.uniform(k1, (2 * d_node + d_edge, d_edge),
                                     jnp.float32, -s_e, s_e),
            "be": jnp.zeros((1, d_edge), jnp.float32),
            "wnx": jax.random.uniform(k2, (d_node, d_node),
                                      jnp.float32, -s_n, s_n),
            "wna": jax.random.uniform(k3, (d_edge, d_node),
                                      jnp.float32, -s_n, s_n),
            "bn": jnp.zeros((1, d_node), jnp.float32),
        })
    return params


if __name__ == "__main__":
    N, E = 384, 1024          # nodes, edges (small but multi-tile / multi-chunk)
    D_NODE, D_EDGE = 32, 16   # feature dims
    NUM_LAYERS = 3
    ALPHA = 0.5

    key = jax.random.PRNGKey(0)
    kx, ke, ki, kp = jax.random.split(key, 4)
    x = jax.random.normal(kx, (N, D_NODE), jnp.float32)
    edge_attr = jax.random.normal(ke, (E, D_EDGE), jnp.float32)
    edge_index = jax.random.randint(ki, (2, E), 0, N, jnp.int32)
    layer_params = init_layer_params(kp, NUM_LAYERS, D_NODE, D_EDGE)

    x_out, e_out, e_hidden = residual_network_forward(
        x, edge_index, edge_attr, layer_params,
        alpha=ALPHA, collect_hidden_edge_embeds=True)
    jax.block_until_ready((x_out, e_out, e_hidden))

    # Sanity check against a pure-JAX f32 reference (bf16 activation/weight
    # path => loose tolerance).
    x_ref, e_ref = _reference_forward(x, edge_index, edge_attr,
                                      layer_params, ALPHA)
    assert x_out.shape == (N, D_NODE) and e_out.shape == (E, D_EDGE)
    assert len(e_hidden) == NUM_LAYERS + 1  # includes the input edge_attr
    assert jnp.allclose(x_out, x_ref, rtol=5e-2, atol=5e-2), \
        float(jnp.max(jnp.abs(x_out - x_ref)))
    assert jnp.allclose(e_out, e_ref, rtol=5e-2, atol=5e-2), \
        float(jnp.max(jnp.abs(e_out - e_ref)))

    print("KERNEL_OK")
</pallas_src>

<mosaic_0001>
module attributes {stable_mosaic.version = 11 : i64} {
  func.func @_edge_mlp_kernel(%arg0: i32, %arg1: memref<512x128xbf16, #tpu.memory_space<vmem>>, %arg2: memref<512x128xbf16, #tpu.memory_space<vmem>>, %arg3: memref<512x128xbf16, #tpu.memory_space<vmem>>, %arg4: memref<128x128xbf16, #tpu.memory_space<vmem>>, %arg5: memref<128x128xbf16, #tpu.memory_space<vmem>>, %arg6: memref<128x128xbf16, #tpu.memory_space<vmem>>, %arg7: memref<1x128xf32, #tpu.memory_space<vmem>>, %arg8: memref<512x128xbf16, #tpu.memory_space<vmem>>) attributes {dimension_semantics = [#tpu.dimension_semantics<parallel>], iteration_bounds = array<i64: 2>, scalar_prefetch = 0 : i64, scratch_operands = 0 : i64, tpu.core_type = #tpu.core_type<tc>, window_params = [{transform_indices = @transform_0, window_bounds = array<i64: 512, 128>}, {transform_indices = @transform_1, window_bounds = array<i64: 512, 128>}, {transform_indices = @transform_2, window_bounds = array<i64: 512, 128>}, {pipeline_mode = #tpu.pipeline_mode<synchronous>, transform_indices = @transform_3, window_bounds = array<i64: 128, 128>}, {pipeline_mode = #tpu.pipeline_mode<synchronous>, transform_indices = @transform_4, window_bounds = array<i64: 128, 128>}, {pipeline_mode = #tpu.pipeline_mode<synchronous>, transform_indices = @transform_5, window_bounds = array<i64: 128, 128>}, {pipeline_mode = #tpu.pipeline_mode<synchronous>, transform_indices = @transform_6, window_bounds = array<i64: 1, 128>}, {transform_indices = @transform_7, window_bounds = array<i64: 512, 128>}]} {
    %c0 = arith.constant 0 : index
    %c0_0 = arith.constant 0 : index
    %0 = vector.load %arg1[%c0, %c0_0] : memref<512x128xbf16, #tpu.memory_space<vmem>>, vector<512x128xbf16>
    %c0_1 = arith.constant 0 : index
    %c0_2 = arith.constant 0 : index
    %1 = vector.load %arg4[%c0_1, %c0_2] : memref<128x128xbf16, #tpu.memory_space<vmem>>, vector<128x128xbf16>
    %cst = arith.constant dense<0.000000e+00> : vector<512x128xf32>
    %2 = tpu.matmul %0, %1, %cst {dimension_numbers = #tpu.dot_dimension_numbers<[1], [0], [0], [1], [0, 0, 1, 1], [], []>} : vector<512x128xbf16>, vector<128x128xbf16>, vector<512x128xf32> -> vector<512x128xf32>
    %c0_3 = arith.constant 0 : index
    %c0_4 = arith.constant 0 : index
    %3 = vector.load %arg2[%c0_3, %c0_4] : memref<512x128xbf16, #tpu.memory_space<vmem>>, vector<512x128xbf16>
    %c0_5 = arith.constant 0 : index
    %c0_6 = arith.constant 0 : index
    %4 = vector.load %arg5[%c0_5, %c0_6] : memref<128x128xbf16, #tpu.memory_space<vmem>>, vector<128x128xbf16>
    %cst_7 = arith.constant dense<0.000000e+00> : vector<512x128xf32>
    %5 = tpu.matmul %3, %4, %cst_7 {dimension_numbers = #tpu.dot_dimension_numbers<[1], [0], [0], [1], [0, 0, 1, 1], [], []>} : vector<512x128xbf16>, vector<128x128xbf16>, vector<512x128xf32> -> vector<512x128xf32>
    %6 = arith.addf %2, %5 : vector<512x128xf32>
    %c0_8 = arith.constant 0 : index
    %c0_9 = arith.constant 0 : index
    %7 = vector.load %arg3[%c0_8, %c0_9] : memref<512x128xbf16, #tpu.memory_space<vmem>>, vector<512x128xbf16>
    %c0_10 = arith.constant 0 : index
    %c0_11 = arith.constant 0 : index
    %8 = vector.load %arg6[%c0_10, %c0_11] : memref<128x128xbf16, #tpu.memory_space<vmem>>, vector<128x128xbf16>
    %cst_12 = arith.constant dense<0.000000e+00> : vector<512x128xf32>
    %9 = tpu.matmul %7, %8, %cst_12 {dimension_numbers = #tpu.dot_dimension_numbers<[1], [0], [0], [1], [0, 0, 1, 1], [], []>} : vector<512x128xbf16>, vector<128x128xbf16>, vector<512x128xf32> -> vector<512x128xf32>
    %10 = arith.addf %6, %9 : vector<512x128xf32>
    %c0_13 = arith.constant 0 : index
    %c0_14 = arith.constant 0 : index
    %11 = vector.load %arg7[%c0_13, %c0_14] : memref<1x128xf32, #tpu.memory_space<vmem>>, vector<1x128xf32>
    %12 = vector.broadcast %11 : vector<1x128xf32> to vector<512x128xf32>
    %13 = arith.addf %10, %12 : vector<512x128xf32>
    %cst_15 = arith.constant 0.000000e+00 : f32
    %14 = vector.broadcast %cst_15 : f32 to vector<512x128xf32>
    %15 = arith.maximumf %13, %14 : vector<512x128xf32>
    %16 = arith.truncf %15 : vector<512x128xf32> to vector<512x128xbf16>
    %c0_16 = arith.constant 0 : index
    %c0_17 = arith.constant 0 : index
    %17 = vector.load %arg8[%c0_16, %c0_17] : memref<512x128xbf16, #tpu.memory_space<vmem>>, vector<512x128xbf16>
    tpu.vector_store %arg8[%c0_16, %c0_17], %16 {strides = array<i32>} : memref<512x128xbf16, #tpu.memory_space<vmem>>, vector<512x128xbf16>,
    return
  }
  func.func @transform_0(%arg0: i32) -> (i32, i32) {
    %c0_i32 = arith.constant 0 : i32
    %c0_i32_0 = arith.constant 0 : i32
    return %arg0, %c0_i32 : i32, i32
  }
  func.func @transform_1(%arg0: i32) -> (i32, i32) {
    %c0_i32 = arith.constant 0 : i32
    %c0_i32_0 = arith.constant 0 : i32
    return %arg0, %c0_i32 : i32, i32
  }
  func.func @transform_2(%arg0: i32) -> (i32, i32) {
    %c0_i32 = arith.constant 0 : i32
    %c0_i32_0 = arith.constant 0 : i32
    return %arg0, %c0_i32 : i32, i32
  }
  func.func @transform_3(%arg0: i32) -> (i32, i32) {
    %c0_i32 = arith.constant 0 : i32
    %c0_i32_0 = arith.constant 0 : i32
    %c0_i32_1 = arith.constant 0 : i32
    return %c0_i32, %c0_i32_0 : i32, i32
  }
  func.func @transform_4(%arg0: i32) -> (i32, i32) {
    %c0_i32 = arith.constant 0 : i32
    %c0_i32_0 = arith.constant 0 : i32
    %c0_i32_1 = arith.constant 0 : i32
    return %c0_i32, %c0_i32_0 : i32, i32
  }
  func.func @transform_5(%arg0: i32) -> (i32, i32) {
    %c0_i32 = arith.constant 0 : i32
    %c0_i32_0 = arith.constant 0 : i32
    %c0_i32_1 = arith.constant 0 : i32
    return %c0_i32, %c0_i32_0 : i32, i32
  }
  func.func @transform_6(%arg0: i32) -> (i32, i32) {
    %c0_i32 = arith.constant 0 : i32
    %c0_i32_0 = arith.constant 0 : i32
    %c0_i32_1 = arith.constant 0 : i32
    return %c0_i32, %c0_i32_0 : i32, i32
  }
  func.func @transform_7(%arg0: i32) -> (i32, i32) {
    %c0_i32 = arith.constant 0 : i32
    %c0_i32_0 = arith.constant 0 : i32
    return %arg0, %c0_i32 : i32, i32
  }
}

</mosaic_0001>

<bundles_post_ra>
// kernel: tpu_custom_call.1
= control target key start
LH: loop header
LB: loop body
LE: loop exit
PB: predicated region body
PF: predicated region fallthrough
CT: control target
= control target key end

     0   :  { %s4983_s0 = inlined_call_operand.hbm [shape: bf16[1024,128], index: 0, kind: input, shape index: {}]   ;;  %s4984_s1 = inlined_call_operand.hbm [shape: bf16[1024,128], index: 1, kind: input, shape index: {}]   ;;  %s4985_s2 = inlined_call_operand.hbm [shape: bf16[1024,128], index: 2, kind: input, shape index: {}]   ;;  %s4986_s3 = inlined_call_operand.hbm [shape: bf16[128,128], index: 3, kind: input, shape index: {}]   ;;  %s4987_s4 = inlined_call_operand.hbm [shape: bf16[128,128], index: 4, kind: input, shape index: {}]   ;;  %s4988_s5 = inlined_call_operand.hbm [shape: bf16[128,128], index: 5, kind: input, shape index: {}]   ;;  %s4989_s6 = inlined_call_operand.vmem [shape: f32[1,128], index: 6, kind: input, shape index: {}]   ;;  %s4990_s7 = inlined_call_operand.hbm [shape: bf16[1024,128], index: 7, kind: output, shape index: {}]  }
   0x1   :  { %5007 = sst [smem:[#allocation43_spill]] %s4984_s1 }
   0x2   :  { %5008 = sst [smem:[#allocation44_spill]] %s4986_s3 }
   0x3   :  { %5009 = sst [smem:[#allocation45_spill]] %s4987_s4 }
   0x4   :  { %5010 = sst [smem:[#allocation46_spill]] %s4988_s5 }
   0x5   :  { %12 = vsyncpa [#allocation3], 0 }
   0x6   :  { %14 = vsyncpa [#allocation3 + $0x1], 0 }
   0x7   :  { %15 = vsyncpa [#allocation6], 0 }
   0x8   :  { %17 = vsyncpa [#allocation6 + $0x1], 0 }
   0x9   :  { %18 = vsyncpa [#allocation9], 0 }
   0xa   :  { %19 = vsyncpa [#allocation12], 0 }
   0xb   :  { %20 = vsyncpa [#allocation4], 0 }
   0xc   :  { %22 = vsyncpa [#allocation4 + $0x1], 0  ;;  %s4278_s24 = smov 0   ;;  %s4280_s25 = smov 0  }
   0xd   :  { %s4282_s26 = smov 0   ;;  %s4284_s27 = smov 0  }
   0xe LB: > { %5011 = sst [smem:[#allocation19_spill]] %s4225_s27  ;;  %s4299_s28 = sadd.s32 4294967295, %s4225_s27   ;;  %s4225_s27 = sphi %s4284_s27, %s5084_s27   ;;  %s4221_s26 = sphi %s4282_s26, %s5088_s26   ;;  %s4217_s25 = sphi %s4280_s25, %s5087_s25   ;;  %s4213_s24 = sphi %s4278_s24, %s5086_s24  }
   0xf   : > { %s2928_s29 = sadd.s32 4294967294, %s4225_s27   ;;  %s4303_s30 = sadd.s32 1, %s4225_s27  }
  0x10   : > { %5012 = sst [smem:[#allocation20_spill]] %s4303_s30  ;;  %s35_s8 = sadd.s32 1, %s4221_s26 }
  0x11   : > { %s32_s9 = ssub.s32 %s4225_s27, %s4303_s30  ;;  %p42_p0 = scmp.ne.s32.totalorder %s4221_s26, %s4217_s25 }
  0x12   : > { %p33_p1 = scmp.eq.s32.totalorder %s32_s9, 0  ;;  %p43_p2 = scmp.eq.s32.totalorder %s4225_s27, 0 }
  0x13   : > { %p48_p3 = scmp.ne.s32.totalorder %s4217_s25, %s4213_s24  ;;  %p4991_p4 = scmp.eq.s32.totalorder %s4299_s28, 0 }
  0x14   : > { %s4315_s10 = scalar_select %p33_p1, %s4221_s26, %s35_s8  }
  0x15   : > { %p4317_p5 = por %p43_p2, %p42_p0  ;;  %p4323_p6 = por %p4991_p4, %p48_p3 }
  0x16   : > { %5013 = sst [smem:[#allocation21_spill]] %s4315_s10  ;;  %p208_p7 = scmp.eq.s32.totalorder %s4299_s28, 1 }
  0x17   : > { %s5015_s12 = scalar_select %p4323_p6, 1, 0 }
  0x18   : > { %p214_p8 = scmp.eq.s32.totalorder %s2928_s29, 1  ;;  %p2929_p9 = scmp.ge.s32.totalorder %s4225_s27, 1 }
  0x19   : > { %p221_p10 = scmp.lt.s32.totalorder %s4225_s27, 3  ;;  %p4330_p11 = por %p208_p7, %p42_p0 }
  0x1a   : > { %p4334_p12 = por %p214_p8, %p48_p3  ;;  %s4227_s16 = smov [#allocation8]  }
  0x1b   : > { %s5016_s13 = scalar_select %p4330_p11, 1, 0 }
  0x1c   : > { %s5017_s14 = scalar_select %p4334_p12, 1, 0 }
  0x1d   : > { %p4338_p13 = pnand %p2929_p9, %p221_p10  ;;  %s233_s17 = sshll.u32 %s4227_s16, 4  ;;  %s234_s17 = int_to_ptr.vmem [resolvable:$true] %s233_s17 }
  0x1e   : > { %5018 = sst [smem:[#allocation22_spill]] %s5017_s14  ;;  %p3823_p3 = scmp.lt.s32.totalorder %s4225_s27, 2 }
  0x1f   : > { %s5019_s15 = scalar_select %p4338_p13, 1, 0 }
  0x20   : > { %p3796_p1 = pneg %p4338_p13  ;;  %s4993_s19 = sand.u32 1, %s4221_s26  }
  0x21   : > { %s4355_s20 = sshll.u32 %s4993_s19, 8  ;;  %s3998_s21 = scalar_lea.vmem %s234_s17, 1024 }
  0x22   : > { %p4346_p2 = pnand %p3796_p1, %p4991_p4  ;;  %p3999_p8 = scmp.ne.s32.totalorder %s234_s17, %s3998_s21 }
  0x23   : > { %p4006_p1 = scmp.lt.s32.totalorder %s234_s17, %s234_s17  ;;  %p4007_p4 = scmp.lt.s32.totalorder %s3998_s21, %s3998_s21 }
  0x24   : > { %s5020_s18 = scalar_select %p4346_p2, 1, 0 }
  0x25   : > { %p5001_p7 = pneg %p4346_p2  ;;  %p4008_p12 = por %p4007_p4, %p4006_p1 }
  0x27   : > { %p4001_p9 = pnand %p3999_p8, %p5001_p7 }
  0x29   : > { %p4002_p10 = pneg %p4001_p9 }
  0x2b   : > { %p4009_p11 = pnand %p4008_p12, %p4002_p10 }
  0x2d   : > { %4012 = shalt.err (!%p4009_p11)
}
  0x2e   : > { %s4996_s22 = smov 64   ;;  %s4998_s23 = smov 4  }
  0x2f   : > { %s5021_s3 = sld [smem:[#allocation44_spill]]  ;;  %s4371_s9 = sshll.u32 %s4225_s27, 12 }
  0x30   : > { %p4377_p4 = pnand %p3823_p3, %p4317_p5  ;;  %s297_s21 = sand.u32 1, %s4225_s27  }
  0x31   : > { %s5023_s1 = sld [smem:[#allocation43_spill]]  ;;  %s4391_s11 = scalar_lea.sflag [#allocation6], %s297_s21 }
  0x32   : > { %p4397_p11 = pneg %p4377_p4 }
  0x35   : > { %3799 = dma.hbm_to_vmem [thread:$0]  (!%p4346_p2), %s5021_s3, 1024, %s234_s17, [#allocation9], %s4996_s22, %s4996_s22, %s4998_s23  }
  0x36   : > { %s301_s17 = scalar_lea.vmem [#allocation5], %s4355_s20 }
  0x37   : > { %s4386_s30 = scalar_lea.hbm %s5023_s1, %s4371_s9  ;;  %s308_s29 = sshll.u32 %s301_s17, 4  ;;  %s4389_s29 = int_to_ptr.vmem [resolvable:$true] %s308_s29 }
  0x38   : > { %s4013_s8 = scalar_lea.hbm %s4386_s30, 4096  ;;  %s4018_s23 = scalar_lea.hbm %s5023_s1, 8192 }
  0x39   : > { %p4014_p5 = scmp.ne.s32.totalorder %s4386_s30, %s4013_s8  ;;  %p4019_p8 = scmp.lt.s32.totalorder %s4386_s30, %s5023_s1 }
  0x3a   : > { %p4020_p9 = scmp.lt.s32.totalorder %s4018_s23, %s4013_s8 }
  0x3b   : > { %p4016_p12 = pnand %p4397_p11, %p4014_p5 }
  0x3c   : > { %p4021_p10 = por %p4020_p9, %p4019_p8 }
  0x3d   : > { %p4017_p3 = pneg %p4016_p12 }
  0x3f   : > { %p4022_p1 = pnand %p4021_p10, %p4017_p3 }
  0x41   : > { %4025 = shalt.err (!%p4022_p1)
}
  0x42   : > { %s4026_s21 = scalar_lea.vmem %s4389_s29, 4096  ;;  %s4230_s27 = smov [#allocation5]  }
  0x43   : > { %p4027_p0 = scmp.ne.s32.totalorder %s4389_s29, %s4026_s21  ;;  %s4031_s10 = sshll.u32 %s4230_s27, 4  ;;  %s4032_s10 = int_to_ptr.vmem [resolvable:$false] %s4031_s10 }
  0x44   : > { %s4033_s19 = scalar_lea.vmem %s4032_s10, 8192  ;;  %p4034_p7 = scmp.lt.s32.totalorder %s4389_s29, %s4032_s10 }
  0x45   : > { %p4029_p5 = pnand %p4027_p0, %p4397_p11  ;;  %p4035_p6 = scmp.lt.s32.totalorder %s4033_s19, %s4026_s21 }
  0x47   : > { %p4030_p12 = pneg %p4029_p5  ;;  %p4036_p13 = por %p4035_p6, %p4034_p7 }
  0x49   : > { %p4037_p2 = pnand %p4036_p13, %p4030_p12 }
  0x4b   : > { %4040 = shalt.err (!%p4037_p2)
}
  0x4c   : > { %s5025_s3 = smov 4   ;;  %s5026_s23 = smov 64  }
  0x4d   : > { %3812 = dma.hbm_to_vmem [thread:$0]  (!%p4377_p4), %s4386_s30, 4096, %s4389_s29, %s4391_s11, %s5026_s23, %s5026_s23, %s5025_s3  }
  0x4e   : > { %s4231_s8 = smov [#allocation10]   ;;  %s4232_s27 = smov [#allocation11]  }
  0x4f   : > { %s246_s17 = sshll.u32 %s4231_s8, 4  ;;  %s259_s1 = sshll.u32 %s4232_s27, 4  ;;  %s247_s17 = int_to_ptr.vmem [resolvable:$true] %s246_s17  ;;  %s260_s1 = int_to_ptr.vmem [resolvable:$true] %s259_s1 }
  0x50   : > { %s4052_s10 = scalar_lea.vmem %s247_s17, 1024  ;;  %p5027_p6 = scmp.ne.s32.totalorder %s5020_s18, 0 }
  0x51   : > { %p4053_p0 = scmp.ne.s32.totalorder %s247_s17, %s4052_s10  ;;  %p4060_p3 = scmp.lt.s32.totalorder %s247_s17, %s247_s17 }
  0x52   : > { %p5028_p13 = pneg %p5027_p6  ;;  %p4061_p8 = scmp.lt.s32.totalorder %s4052_s10, %s4052_s10 }
  0x54   : > { %p4055_p2 = pnand %p4053_p0, %p5028_p13  ;;  %p4062_p9 = por %p4061_p8, %p4060_p3 }
  0x56   : > { %p4056_p7 = pneg %p4055_p2 }
  0x58   : > { %p4063_p10 = pnand %p4062_p9, %p4056_p7 }
  0x5a   : > { %4066 = shalt.err (!%p4063_p10)
}
  0x5b   : > { %s5029_s4 = sld [smem:[#allocation45_spill]]  ;;  %s4078_s21 = scalar_lea.vmem %s260_s1, 1024 }
  0x5c   : > { %p4079_p1 = scmp.ne.s32.totalorder %s260_s1, %s4078_s21  ;;  %p5030_p5 = pmov %p5028_p13 }
  0x5d   : > { %p4086_p13 = scmp.lt.s32.totalorder %s260_s1, %s260_s1  ;;  %p4087_p2 = scmp.lt.s32.totalorder %s4078_s21, %s4078_s21 }
  0x5e   : > { %p4081_p12 = pnand %p4079_p1, %p5030_p5 }
  0x5f   : > { %p4088_p7 = por %p4087_p2, %p4086_p13 }
  0x60   : > { %p4082_p0 = pneg %p4081_p12 }
  0x61   : > { %3802 = dma.hbm_to_vmem [thread:$0]  (!%p5027_p6), %s5029_s4, 1024, %s247_s17, [#allocation9], %s5026_s23, %s5026_s23, %s5025_s3  }
  0x62   : > { %p4089_p3 = pnand %p4088_p7, %p4082_p0 }
  0x64   : > { %4092 = shalt.err (!%p4089_p3)
}
  0x65   : > { %s5031_s5 = sld [smem:[#allocation46_spill]]  ;;  %s4449_s10 = scalar_lea.hbm %s4983_s0, %s4371_s9 }
  0x66   : > { %s280_s18 = scalar_lea.vmem [#allocation2], %s4355_s20  ;;  %s4458_s19 = scalar_lea.hbm %s4985_s2, %s4371_s9 }
  0x67   : > { %s287_s30 = sshll.u32 %s280_s18, 4  ;;  %s5032_s8 = sand.u32 1, %s4221_s26   ;;  %s4452_s30 = int_to_ptr.vmem [resolvable:$true] %s287_s30 }
  0x68   : > { %s277_s4 = scalar_lea.sflag [#allocation3], %s5032_s8  ;;  %p4099_p10 = scmp.lt.s32.totalorder %s4449_s10, %s4983_s0 }
  0x6b   : > { %3805 = dma.hbm_to_vmem [thread:$0]  (!%p5027_p6), %s5031_s5, 1024, %s260_s1, [#allocation12], %s5026_s23, %s5026_s23, %s5025_s3  }
  0x6c   : > { %s4093_s1 = scalar_lea.hbm %s4449_s10, 4096  ;;  %s4098_s5 = scalar_lea.hbm %s4983_s0, 8192 }
  0x6d   : > { %p4094_p6 = scmp.ne.s32.totalorder %s4449_s10, %s4093_s1  ;;  %p4100_p1 = scmp.lt.s32.totalorder %s4098_s5, %s4093_s1 }
  0x6f   : > { %p4096_p8 = pnand %p4094_p6, %p4397_p11  ;;  %p4101_p5 = por %p4100_p1, %p4099_p10 }
  0x71   : > { %p4097_p9 = pneg %p4096_p8 }
  0x73   : > { %p4102_p12 = pnand %p4101_p5, %p4097_p9 }
  0x75   : > { %4105 = shalt.err (!%p4102_p12)
}
  0x76   : > { %s4106_s9 = scalar_lea.vmem %s4452_s30, 4096  ;;  %s4233_s29 = smov [#allocation2]  }
  0x77   : > { %p4107_p0 = scmp.ne.s32.totalorder %s4452_s30, %s4106_s9  ;;  %s4111_s21 = sshll.u32 %s4233_s29, 4  ;;  %s4112_s21 = int_to_ptr.vmem [resolvable:$false] %s4111_s21 }
  0x78   : > { %s4113_s8 = scalar_lea.vmem %s4112_s21, 8192  ;;  %p4114_p7 = scmp.lt.s32.totalorder %s4452_s30, %s4112_s21 }
  0x79   : > { %p4109_p13 = pnand %p4107_p0, %p4397_p11  ;;  %p4115_p3 = scmp.lt.s32.totalorder %s4113_s8, %s4106_s9 }
  0x7b   : > { %p4110_p2 = pneg %p4109_p13  ;;  %p4116_p6 = por %p4115_p3, %p4114_p7 }
  0x7d   : > { %p4117_p8 = pnand %p4116_p6, %p4110_p2 }
  0x7f   : > { %4120 = shalt.err (!%p4117_p8)
}
  0x80   : > { %3809 = dma.hbm_to_vmem [thread:$0]  (!%p4377_p4), %s4449_s10, 4096, %s4452_s30, %s277_s4, %s5026_s23, %s5026_s23, %s5025_s3  }
  0x81   : > { %s322_s5 = scalar_lea.vmem [#allocation7], %s4355_s20  ;;  %s4121_s1 = scalar_lea.hbm %s4458_s19, 4096 }
  0x82   : > { %s329_s14 = sshll.u32 %s322_s5, 4  ;;  %p4122_p9 = scmp.ne.s32.totalorder %s4458_s19, %s4121_s1  ;;  %s330_s14 = int_to_ptr.vmem [resolvable:$true] %s329_s14 }
  0x83   : > { %s4126_s18 = scalar_lea.hbm %s4985_s2, 8192  ;;  %p4127_p5 = scmp.lt.s32.totalorder %s4458_s19, %s4985_s2 }
  0x84   : > { %p4124_p10 = pnand %p4122_p9, %p4397_p11  ;;  %p4128_p12 = scmp.lt.s32.totalorder %s4126_s18, %s4121_s1 }
  0x86   : > { %p4125_p1 = pneg %p4124_p10  ;;  %p4129_p0 = por %p4128_p12, %p4127_p5 }
  0x88   : > { %p4130_p13 = pnand %p4129_p0, %p4125_p1 }
  0x8a   : > { %4133 = shalt.err (!%p4130_p13)
}
  0x8b   : > { %s4134_s4 = scalar_lea.vmem %s330_s14, 4096  ;;  %s4234_s20 = smov [#allocation7]  }
  0x8c   : > { %p4135_p2 = scmp.ne.s32.totalorder %s330_s14, %s4134_s4  ;;  %s4139_s10 = sshll.u32 %s4234_s20, 4  ;;  %s4140_s10 = int_to_ptr.vmem [resolvable:$false] %s4139_s10 }
  0x8d   : > { %s4141_s30 = scalar_lea.vmem %s4140_s10, 8192  ;;  %p4142_p6 = scmp.lt.s32.totalorder %s330_s14, %s4140_s10 }
  0x8e   : > { %p4137_p7 = pnand %p4135_p2, %p4397_p11  ;;  %p4143_p8 = scmp.lt.s32.totalorder %s4141_s30, %s4134_s4 }
  0x90   : > { %p4138_p3 = pneg %p4137_p7  ;;  %p4144_p9 = por %p4143_p8, %p4142_p6 }
  0x92   : > { %p4145_p10 = pnand %p4144_p9, %p4138_p3 }
  0x94   : > { %4148 = shalt.err (!%p4145_p10)
}
  0x95   : > { %3815 = dma.hbm_to_vmem [thread:$0]  (!%p4377_p4), %s4458_s19, 4096, %s330_s14, %s4391_s11, %s5026_s23, %s5026_s23, %s5025_s3  }
  0x96   : > { %p5033_p11 = scmp.ne.s32.totalorder %s5019_s15, 0 }
  0x98   : > { %341 = sbr.rel (%p5033_p11) target bundleno = 610 (0x262), region = 48 }
  0x9d   : > { %s4509_s22 = sand.u32 1, %s4217_s25   ;;  %p5034_p1 = scmp.ne.s32.totalorder %s5015_s12, 0 }
  0x9e   : > { %s4512_s21 = sshll.u32 %s4509_s22, 8  ;;  %s344_s8 = scalar_lea.sflag [#allocation3], %s4509_s22 }
  0x9f   : > { %s4516_s16 = scalar_lea.vmem [#allocation2], %s4512_s21 }
  0xa0   : > { %4192 = dma.done.wait (%p5034_p1), %s344_s8, 4096  }
  0xa1   : > { %4194 = vsyncadd (%p5034_p1), %s344_s8, 4294963200  ;;  %s352_s15 = sand.u32 1, %s4299_s28   ;;  %s4524_s3 = scalar_lea.vmem [#allocation5], %s4512_s21 }
  0xa2   : > { %s353_s11 = scalar_lea.sflag [#allocation6], %s352_s15 }
  0xa3   : > { %4196 = dma.done.wait (%p5034_p1), %s353_s11, 8192  }
  0xa4   : > { %4198 = vsyncadd (%p5034_p1), %s353_s11, 4294959104  ;;  %s4531_s23 = scalar_lea.vmem [#allocation7], %s4512_s21  ;;  %p5035_p4 = scmp.eq.s32.totalorder %s4299_s28, 0 }
  0xa6   : > { %4200 = dma.done.wait (%p5035_p4), [#allocation9], 2048   ;;  %p5036_p5 = pmov %p5035_p4 }
  0xa7   : > { %p5037_p12 = pmov %p5035_p4 }
  0xa8   : > { %4202 = vsyncadd (%p5036_p5), [#allocation9], 4294965248 }
  0xa9   : > { %4204 = dma.done.wait (%p5037_p12), [#allocation12], 1024   ;;  %p5038_p0 = pmov %p5035_p4 }
  0xaa   : > { %v3867_v0 = vld [vmem:[#allocation10 + $0x38] sm:$0xff]   ;;  %v3868_v1 = vld [vmem:[#allocation10 + $0x30] sm:$0xff]   ;;  %v3869_v2 = vld [vmem:[#allocation10 + $0x28] sm:$0xff]   ;;  %s4782_s5 = scalar_lea.vmem [#allocation13], %s4512_s21  ;;  %s3208_s14 = sshll.u32 %s4299_s28, 12 }
  0xab   : > { %4206 = vsyncadd (%p5038_p0), [#allocation12], 4294966272  ;;  %3520 = vmatprep.subr.bf16.mxu0 %v3867_v0  ;;  %3760 = vmatprep.subr.bf16.mxu1 %v3867_v0  ;;  %v3870_v3 = vld [vmem:[#allocation10 + $0x20] sm:$0xff]   ;;  %v3871_v6 = vld [vmem:[#allocation10 + $0x18] sm:$0xff]   ;;  %s2783_s1 = sshll.u32 %s4782_s5, 4  ;;  %s4936_s18 = scalar_lea.hbm %s4990_s7, %s3208_s14  ;;  %s4938_s1 = int_to_ptr.vmem [resolvable:$true] %s2783_s1 }
  0xac   : > { %3521 = vmatpush3.bf16.msra.mxu0 %v3867_v0  ;;  %3768 = vmatpush3.bf16.msra.mxu1 %v3867_v0  ;;  %v3875_v4 = vld [vmem:[%s4524_s3] sm:$0xff]   ;;  %v3872_v7 = vld [vmem:[#allocation10 + $0x10] sm:$0xff]   ;;  %v3873_v8 = vld [vmem:[#allocation10 + $0x8] sm:$0xff]   ;;  %s2770_s9 = scalar_lea.sflag [#allocation4], %s4509_s22  ;;  %s4149_s29 = scalar_lea.vmem %s4938_s1, 4096 }
  0xad   : > { %3522 = vmatprep.subr.bf16.mxu0 %v3868_v1  ;;  %3761 = vmatprep.subr.bf16.mxu1 %v3868_v1  ;;  %v3876_v5 = vld [vmem:[%s4524_s3 + $0x80] sm:$0xff]   ;;  %v3879_v10 = vld [vmem:[#allocation8 + $0x38] sm:$0xff]   ;;  %v3877_v11 = vld [vmem:[%s4524_s3 + $0x8] sm:$0xff]   ;;  %p4150_p13 = scmp.ne.s32.totalorder %s4938_s1, %s4149_s29  ;;  %p5079_p2 = scmp.ne.s32.totalorder %s5016_s13, 0 }
  0xae   : > { %3536 = vmatprep.mubr.bf16.mxu0 %v3875_v4  ;;  %3568 = vmatprep.mubr.bf16.mxu1 %v3876_v5  ;;  %v3874_v9 = vld [vmem:[#allocation10] sm:$0xff]   ;;  %v3880_v12 = vld [vmem:[#allocation11 + $0x38] sm:$0xff]   ;;  %v3878_v13 = vld [vmem:[%s4524_s3 + $0x88] sm:$0xff]   ;;  %s4235_s28 = smov [#allocation13]  }
  0xaf   : > { %v3881_v14 = vld [vmem:[%s4524_s3 + $0x10] sm:$0xff]   ;;  %v3891_v18 = vld [vmem:[#allocation8 + $0x28] sm:$0xff]   ;;  %v3883_v19 = vld [vmem:[%s4524_s3 + $0x18] sm:$0xff]   ;;  %p4151_p7 = pnand %p4150_p13, %p5079_p2  ;;  %s4153_s4 = sshll.u32 %s4235_s28, 4  ;;  %s4154_s4 = int_to_ptr.vmem [resolvable:$false] %s4153_s4 }
  0xb0   : > { %3523 = vmatpush3.bf16.msra.mxu0 %v3868_v1  ;;  %3769 = vmatpush3.bf16.msra.mxu1 %v3868_v1  ;;  %v3882_v15 = vld [vmem:[%s4524_s3 + $0x90] sm:$0xff]   ;;  %v3892_v20 = vld [vmem:[#allocation11 + $0x28] sm:$0xff]   ;;  %v3884_v21 = vld [vmem:[%s4524_s3 + $0x98] sm:$0xff]   ;;  %s4155_s20 = scalar_lea.vmem %s4154_s4, 8192  ;;  %p4156_p6 = scmp.lt.s32.totalorder %s4938_s1, %s4154_s4 }
  0xb1   : > { %3524 = vmatprep.subr.bf16.mxu0 %v3869_v2  ;;  %3762 = vmatprep.subr.bf16.mxu1 %v3869_v2  ;;  %v3885_v16 = vld [vmem:[#allocation8 + $0x30] sm:$0xff]   ;;  %v3887_v22 = vld [vmem:[%s4524_s3 + $0x20] sm:$0xff]   ;;  %v3889_v26 = vld [vmem:[%s4524_s3 + $0x28] sm:$0xff]   ;;  %p4152_p3 = pneg %p4151_p7  ;;  %p4157_p8 = scmp.lt.s32.totalorder %s4155_s20, %s4149_s29 }
  0xb2   : > { %v3886_v17 = vld [vmem:[#allocation11 + $0x30] sm:$0xff]   ;;  %v3888_v23 = vld [vmem:[%s4524_s3 + $0xa0] sm:$0xff]   ;;  %v3890_v27 = vld [vmem:[%s4524_s3 + $0xa8] sm:$0xff]  }
  0xb3   : > { %v3897_v24 = vld [vmem:[#allocation8 + $0x20] sm:$0xff]   ;;  %v3903_v28 = vld [vmem:[#allocation8 + $0x18] sm:$0xff]   ;;  %v3893_v30 = vld [vmem:[%s4524_s3 + $0x30] sm:$0xff]   ;;  %p4158_p9 = por %p4157_p8, %p4156_p6 }
  0xb4   : > { %3525 = vmatpush3.bf16.msra.mxu0 %v3869_v2  ;;  %3770 = vmatpush3.bf16.msra.mxu1 %v3869_v2  ;;  %v3898_v25 = vld [vmem:[#allocation11 + $0x20] sm:$0xff]   ;;  %v3904_v29 = vld [vmem:[#allocation11 + $0x18] sm:$0xff]   ;;  %v3894_v31 = vld [vmem:[%s4524_s3 + $0xb0] sm:$0xff]  }
  0xb5   : > { %3526 = vmatprep.subr.bf16.mxu0 %v3870_v3  ;;  %3763 = vmatprep.subr.bf16.mxu1 %v3870_v3  ;;  %v3909_v32 = vld [vmem:[#allocation8 + $0x10] sm:$0xff]   ;;  %v3895_v34 = vld [vmem:[%s4524_s3 + $0x38] sm:$0xff]   ;;  %v3915_v36 = vld [vmem:[#allocation8 + $0x8] sm:$0xff]   ;;  %p4159_p10 = pnand %p4158_p9, %p4152_p3 }
  0xb6   : > { %v3910_v33 = vld [vmem:[#allocation11 + $0x10] sm:$0xff]   ;;  %v3896_v35 = vld [vmem:[%s4524_s3 + $0xb8] sm:$0xff]   ;;  %v3916_v37 = vld [vmem:[#allocation11 + $0x8] sm:$0xff]  }
  0xb7   : > { %v3899_v38 = vld [vmem:[%s4524_s3 + $0x40] sm:$0xff]   ;;  %v3901_v42 = vld [vmem:[%s4524_s3 + $0x48] sm:$0xff]   ;;  %v3905_v44 = vld [vmem:[%s4524_s3 + $0x50] sm:$0xff]  }
  0xb8   : > { %3527 = vmatpush3.bf16.msra.mxu0 %v3870_v3  ;;  %3771 = vmatpush3.bf16.msra.mxu1 %v3870_v3  ;;  %v3900_v39 = vld [vmem:[%s4524_s3 + $0xc0] sm:$0xff]   ;;  %v3902_v43 = vld [vmem:[%s4524_s3 + $0xc8] sm:$0xff]   ;;  %v3906_v45 = vld [vmem:[%s4524_s3 + $0xd0] sm:$0xff]  }
  0xb9   : > { %3528 = vmatprep.subr.bf16.mxu0 %v3871_v6  ;;  %3764 = vmatprep.subr.bf16.mxu1 %v3871_v6  ;;  %v3921_v40 = vld [vmem:[#allocation8] sm:$0xff]   ;;  %v3907_v46 = vld [vmem:[%s4524_s3 + $0x58] sm:$0xff]   ;;  %v3913_v50 = vld [vmem:[%s4524_s3 + $0x68] sm:$0xff]  }
  0xba   : > { %v3922_v41 = vld [vmem:[#allocation11] sm:$0xff]   ;;  %v3908_v47 = vld [vmem:[%s4524_s3 + $0xd8] sm:$0xff]   ;;  %v3914_v51 = vld [vmem:[%s4524_s3 + $0xe8] sm:$0xff]  }
  0xbb   : > { %v3911_v48 = vld [vmem:[%s4524_s3 + $0x60] sm:$0xff]   ;;  %v3917_v52 = vld [vmem:[%s4524_s3 + $0x70] sm:$0xff]   ;;  %v3919_v54 = vld [vmem:[%s4524_s3 + $0x78] sm:$0xff]  }
  0xbc   : > { %3529 = vmatpush3.bf16.msra.mxu0 %v3871_v6  ;;  %3772 = vmatpush3.bf16.msra.mxu1 %v3871_v6  ;;  %v3912_v49 = vld [vmem:[%s4524_s3 + $0xe0] sm:$0xff]   ;;  %v3918_v53 = vld [vmem:[%s4524_s3 + $0xf0] sm:$0xff]   ;;  %v3920_v55 = vld [vmem:[%s4524_s3 + $0xf8] sm:$0xff]  }
  0xbd   : > { %3530 = vmatprep.subr.bf16.mxu0 %v3872_v7  ;;  %3765 = vmatprep.subr.bf16.mxu1 %v3872_v7  ;;  %v3923_v56 = vld [vmem:[%s4516_s16] sm:$0xff]   ;;  %v3925_v58 = vld [vmem:[%s4516_s16 + $0x8] sm:$0xff]   ;;  %v3927_v60 = vld [vmem:[%s4516_s16 + $0x10] sm:$0xff]  }
  0xbe   : > { %v3924_v57 = vld [vmem:[%s4531_s23] sm:$0xff]   ;;  %v3926_v59 = vld [vmem:[%s4531_s23 + $0x8] sm:$0xff]   ;;  %v3928_v61 = vld [vmem:[%s4531_s23 + $0x10] sm:$0xff]  }
  0xbf   : > { %v3929_v62 = vld [vmem:[%s4516_s16 + $0x18] sm:$0xff]   ;;  %v3931_v0 = vld [vmem:[%s4516_s16 + $0x20] sm:$0xff]   ;;  %v3933_v2 = vld [vmem:[%s4516_s16 + $0x28] sm:$0xff]  }
  0xc0   : > { %3531 = vmatpush3.bf16.msra.mxu0 %v3872_v7  ;;  %3773 = vmatpush3.bf16.msra.mxu1 %v3872_v7  ;;  %v3930_v63 = vld [vmem:[%s4531_s23 + $0x18] sm:$0xff]   ;;  %v3932_v1 = vld [vmem:[%s4531_s23 + $0x20] sm:$0xff]   ;;  %v3934_v3 = vld [vmem:[%s4531_s23 + $0x28] sm:$0xff]  }
  0xc1   : > { %3532 = vmatprep.subr.bf16.mxu0 %v3873_v8  ;;  %3766 = vmatprep.subr.bf16.mxu1 %v3873_v8  ;;  %v3935_v4 = vld [vmem:[%s4516_s16 + $0x30] sm:$0xff]   ;;  %v3937_v6 = vld [vmem:[%s4516_s16 + $0x38] sm:$0xff]  }
  0xc2   : > { %v3936_v5 = vld [vmem:[%s4531_s23 + $0x30] sm:$0xff]   ;;  %v3938_v7 = vld [vmem:[%s4531_s23 + $0x38] sm:$0xff]  }
  0xc4   : > { %3533 = vmatpush3.bf16.msra.mxu0 %v3873_v8  ;;  %3774 = vmatpush3.bf16.msra.mxu1 %v3873_v8  ;;  %v3939_v8 = vld [vmem:[%s4516_s16 + $0x40] sm:$0xff]  }
  0xc5   : > { %3534 = vmatprep.subr.bf16.mxu0 %v3874_v9  ;;  %3767 = vmatprep.subr.bf16.mxu1 %v3874_v9 }
  0xc8   : > { %3535 = vmatpush3.bf16.msra.mxu0 %v3874_v9  ;;  %3775 = vmatpush3.bf16.msra.mxu1 %v3874_v9  ;;  %v3940_v9 = vld [vmem:[%s4531_s23 + $0x40] sm:$0xff]  }
  0xc9   : > { %3600 = vmatprep.subr.bf16.mxu1 %v3879_v10  ;;  %3680 = vmatprep.subr.bf16.mxu0 %v3880_v12 }
  0xcb   : > { %3537 = vmatmul.mubr.bf16.vlgmr.msra.gmra.mxu0 %v3877_v11  ;;  %3569 = vmatmul.mubr.bf16.vlgmr.msra.gmra.mxu1 %v3878_v13  ;;  %v3942_v11 = vld [vmem:[%s4531_s23 + $0x48] sm:$0xff]   ;;  %v3944_v13 = vld [vmem:[%s4531_s23 + $0x50] sm:$0xff]  }
  0xcc   : > { %3601 = vmatpush3.bf16.msra.mxu1 %v3879_v10  ;;  %3681 = vmatpush3.bf16.msra.mxu0 %v3880_v12  ;;  %v3941_v10 = vld [vmem:[%s4516_s16 + $0x48] sm:$0xff]   ;;  %v3943_v12 = vld [vmem:[%s4516_s16 + $0x50] sm:$0xff]  }
  0xcd   : > { %3540 = vmatprep.mubr.bf16.mxu0 %v3881_v14  ;;  %3572 = vmatprep.mubr.bf16.mxu1 %v3882_v15  ;;  %v3945_v14 = vld [vmem:[%s4516_s16 + $0x58] sm:$0xff]  }
  0xce   : > { %3602 = vmatprep.subr.bf16.mxu1 %v3885_v16  ;;  %3682 = vmatprep.subr.bf16.mxu0 %v3886_v17  ;;  %v3946_v15 = vld [vmem:[%s4531_s23 + $0x58] sm:$0xff]  }
  0xd0   : > { %3603 = vmatpush3.bf16.msra.mxu1 %v3885_v16  ;;  %3683 = vmatpush3.bf16.msra.mxu0 %v3886_v17  ;;  %v3947_v16 = vld [vmem:[%s4516_s16 + $0x60] sm:$0xff]  }
  0xd1   : > { %3604 = vmatprep.subr.bf16.mxu1 %v3891_v18  ;;  %3684 = vmatprep.subr.bf16.mxu0 %v3892_v20  ;;  %v3948_v17 = vld [vmem:[%s4531_s23 + $0x60] sm:$0xff]  }
  0xd3   : > { %3541 = vmatmul.mubr.bf16.gmra.mxu0 %v3883_v19  ;;  %3573 = vmatmul.mubr.bf16.gmra.mxu1 %v3884_v21  ;;  %v3950_v19 = vld [vmem:[%s4531_s23 + $0x68] sm:$0xff]   ;;  %v3952_v21 = vld [vmem:[%s4531_s23 + $0x70] sm:$0xff]  }
  0xd4   : > { %3544 = vmatprep.mubr.bf16.mxu0 %v3887_v22  ;;  %3576 = vmatprep.mubr.bf16.mxu1 %v3888_v23  ;;  %v3953_v22 = vld [vmem:[%s4516_s16 + $0x78] sm:$0xff]  }
  0xd5   : > { %3605 = vmatpush3.bf16.msra.mxu1 %v3891_v18  ;;  %3685 = vmatpush3.bf16.msra.mxu0 %v3892_v20  ;;  %v3949_v18 = vld [vmem:[%s4516_s16 + $0x68] sm:$0xff]   ;;  %v3951_v20 = vld [vmem:[%s4516_s16 + $0x70] sm:$0xff]   ;;  %v3954_v23 = vld [vmem:[%s4531_s23 + $0x78] sm:$0xff]  }
  0xd6   : > { %3606 = vmatprep.subr.bf16.mxu1 %v3897_v24  ;;  %3686 = vmatprep.subr.bf16.mxu0 %v3898_v25 }
  0xd9   : > { %3607 = vmatpush3.bf16.msra.mxu1 %v3897_v24  ;;  %3687 = vmatpush3.bf16.msra.mxu0 %v3898_v25  ;;  %v3955_v24 = vld [vmem:[%s4516_s16 + $0x80] sm:$0xff]  }
  0xda   : > { %3608 = vmatprep.subr.bf16.mxu1 %v3903_v28  ;;  %3688 = vmatprep.subr.bf16.mxu0 %v3904_v29  ;;  %v3956_v25 = vld [vmem:[%s4531_s23 + $0x80] sm:$0xff]  }
  0xdb   : > { %3545 = vmatmul.mubr.bf16.gmra.mxu0 %v3889_v26  ;;  %3577 = vmatmul.mubr.bf16.gmra.mxu1 %v3890_v27  ;;  %v3957_v26 = vld [vmem:[%s4516_s16 + $0x88] sm:$0xff]  }
  0xdc   : > { %3548 = vmatprep.mubr.bf16.mxu0 %v3893_v30  ;;  %3580 = vmatprep.mubr.bf16.mxu1 %v3894_v31  ;;  %v3958_v27 = vld [vmem:[%s4531_s23 + $0x88] sm:$0xff]   ;;  %v3961_v30 = vld [vmem:[%s4516_s16 + $0x98] sm:$0xff]  }
  0xdd   : > { %3609 = vmatpush3.bf16.msra.mxu1 %v3903_v28  ;;  %3689 = vmatpush3.bf16.msra.mxu0 %v3904_v29  ;;  %v3959_v28 = vld [vmem:[%s4516_s16 + $0x90] sm:$0xff]   ;;  %v3962_v31 = vld [vmem:[%s4531_s23 + $0x98] sm:$0xff]  }
  0xde   : > { %3610 = vmatprep.subr.bf16.mxu1 %v3909_v32  ;;  %3690 = vmatprep.subr.bf16.mxu0 %v3910_v33  ;;  %v3960_v29 = vld [vmem:[%s4531_s23 + $0x90] sm:$0xff]  }
  0xe1   : > { %3611 = vmatpush3.bf16.msra.mxu1 %v3909_v32  ;;  %3691 = vmatpush3.bf16.msra.mxu0 %v3910_v33  ;;  %v3963_v32 = vld [vmem:[%s4516_s16 + $0xa0] sm:$0xff]  }
  0xe2   : > { %3612 = vmatprep.subr.bf16.mxu1 %v3915_v36  ;;  %3692 = vmatprep.subr.bf16.mxu0 %v3916_v37  ;;  %v3964_v33 = vld [vmem:[%s4531_s23 + $0xa0] sm:$0xff]  }
  0xe3   : > { %3549 = vmatmul.mubr.bf16.gmra.mxu0 %v3895_v34  ;;  %3581 = vmatmul.mubr.bf16.gmra.mxu1 %v3896_v35  ;;  %v3965_v34 = vld [vmem:[%s4516_s16 + $0xa8] sm:$0xff]  }
  0xe4   : > { %3552 = vmatprep.mubr.bf16.mxu0 %v3899_v38  ;;  %3584 = vmatprep.mubr.bf16.mxu1 %v3900_v39  ;;  %v3966_v35 = vld [vmem:[%s4531_s23 + $0xa8] sm:$0xff]   ;;  %v3969_v38 = vld [vmem:[%s4516_s16 + $0xb8] sm:$0xff]  }
  0xe5   : > { %3613 = vmatpush3.bf16.msra.mxu1 %v3915_v36  ;;  %3693 = vmatpush3.bf16.msra.mxu0 %v3916_v37  ;;  %v3967_v36 = vld [vmem:[%s4516_s16 + $0xb0] sm:$0xff]   ;;  %v3970_v39 = vld [vmem:[%s4531_s23 + $0xb8] sm:$0xff]  }
  0xe6   : > { %3614 = vmatprep.subr.bf16.mxu1 %v3921_v40  ;;  %3694 = vmatprep.subr.bf16.mxu0 %v3922_v41  ;;  %v3968_v37 = vld [vmem:[%s4531_s23 + $0xb0] sm:$0xff]  }
  0xe9   : > { %3615 = vmatpush3.bf16.msra.mxu1 %v3921_v40  ;;  %3695 = vmatpush3.bf16.msra.mxu0 %v3922_v41  ;;  %v3971_v40 = vld [vmem:[%s4516_s16 + $0xc0] sm:$0xff]  }
  0xea   : > { %v3972_v41 = vld [vmem:[%s4531_s23 + $0xc0] sm:$0xff]  }
  0xeb   : > { %3553 = vmatmul.mubr.bf16.gmra.mxu0 %v3901_v42  ;;  %3585 = vmatmul.mubr.bf16.gmra.mxu1 %v3902_v43  ;;  %v3973_v42 = vld [vmem:[%s4516_s16 + $0xc8] sm:$0xff]  }
  0xec   : > { %3556 = vmatprep.mubr.bf16.mxu0 %v3905_v44  ;;  %3588 = vmatprep.mubr.bf16.mxu1 %v3906_v45  ;;  %v3974_v43 = vld [vmem:[%s4531_s23 + $0xc8] sm:$0xff]   ;;  %v3975_v44 = vld [vmem:[%s4516_s16 + $0xd0] sm:$0xff]  }
  0xed   : > { %v3976_v45 = vld [vmem:[%s4531_s23 + $0xd0] sm:$0xff]  }
  0xf3   : > { %3557 = vmatmul.mubr.bf16.gmra.mxu0 %v3907_v46  ;;  %3589 = vmatmul.mubr.bf16.gmra.mxu1 %v3908_v47  ;;  %v3977_v46 = vld [vmem:[%s4516_s16 + $0xd8] sm:$0xff]  }
  0xf4   : > { %3560 = vmatprep.mubr.bf16.mxu0 %v3911_v48  ;;  %3592 = vmatprep.mubr.bf16.mxu1 %v3912_v49  ;;  %v3978_v47 = vld [vmem:[%s4531_s23 + $0xd8] sm:$0xff]   ;;  %v3979_v48 = vld [vmem:[%s4516_s16 + $0xe0] sm:$0xff]  }
  0xf5   : > { %v3980_v49 = vld [vmem:[%s4531_s23 + $0xe0] sm:$0xff]  }
  0xfb   : > { %3561 = vmatmul.mubr.bf16.gmra.mxu0 %v3913_v50  ;;  %3593 = vmatmul.mubr.bf16.gmra.mxu1 %v3914_v51  ;;  %v3981_v50 = vld [vmem:[%s4516_s16 + $0xe8] sm:$0xff]  }
  0xfc   : > { %3564 = vmatprep.mubr.bf16.mxu0 %v3917_v52  ;;  %3596 = vmatprep.mubr.bf16.mxu1 %v3918_v53  ;;  %v3982_v51 = vld [vmem:[%s4531_s23 + $0xe8] sm:$0xff]   ;;  %v3983_v52 = vld [vmem:[%s4516_s16 + $0xf0] sm:$0xff]  }
  0xfd   : > { %v3984_v53 = vld [vmem:[%s4531_s23 + $0xf0] sm:$0xff]  }
 0x103   : > { %3565 = vmatmul.mubr.bf16.gmra.mxu0 %v3919_v54  ;;  %3597 = vmatmul.mubr.bf16.gmra.mxu1 %v3920_v55  ;;  %v3985_v54 = vld [vmem:[%s4516_s16 + $0xf8] sm:$0xff]  }
 0x104   : > { %3616 = vmatprep.mubr.bf16.mxu1 %v3923_v56  ;;  %3696 = vmatprep.mubr.bf16.mxu0 %v3924_v57  ;;  %v3986_v55 = vld [vmem:[%s4531_s23 + $0xf8] sm:$0xff]  }
 0x10b   : > { %3617 = vmatmul.mubr.bf16.vlgmr.msra.gmra.mxu1 %v3925_v58  ;;  %3697 = vmatmul.mubr.bf16.vlgmr.msra.gmra.mxu0 %v3926_v59 }
 0x10c   : > { %3620 = vmatprep.mubr.bf16.mxu1 %v3927_v60  ;;  %3700 = vmatprep.mubr.bf16.mxu0 %v3928_v61 }
 0x113   : > { %3621 = vmatmul.mubr.bf16.gmra.mxu1 %v3929_v62  ;;  %3701 = vmatmul.mubr.bf16.gmra.mxu0 %v3930_v63 }
 0x114   : > { %3624 = vmatprep.mubr.bf16.mxu1 %v3931_v0  ;;  %3704 = vmatprep.mubr.bf16.mxu0 %v3932_v1 }
 0x11b   : > { %3625 = vmatmul.mubr.bf16.gmra.mxu1 %v3933_v2  ;;  %3705 = vmatmul.mubr.bf16.gmra.mxu0 %v3934_v3 }
 0x11c   : > { %3628 = vmatprep.mubr.bf16.mxu1 %v3935_v4  ;;  %3708 = vmatprep.mubr.bf16.mxu0 %v3936_v5 }
 0x123   : > { %3629 = vmatmul.mubr.bf16.gmra.mxu1 %v3937_v6  ;;  %3709 = vmatmul.mubr.bf16.gmra.mxu0 %v3938_v7 }
 0x124   : > { %3632 = vmatprep.mubr.bf16.mxu1 %v3939_v8  ;;  %3712 = vmatprep.mubr.bf16.mxu0 %v3940_v9 }
 0x12b   : > { %3633 = vmatmul.mubr.bf16.gmra.mxu1 %v3941_v10  ;;  %3713 = vmatmul.mubr.bf16.gmra.mxu0 %v3942_v11 }
 0x12c   : > { %3636 = vmatprep.mubr.bf16.mxu1 %v3943_v12  ;;  %3716 = vmatprep.mubr.bf16.mxu0 %v3944_v13 }
 0x133   : > { %3637 = vmatmul.mubr.bf16.gmra.mxu1 %v3945_v14  ;;  %3717 = vmatmul.mubr.bf16.gmra.mxu0 %v3946_v15 }
 0x134   : > { %3640 = vmatprep.mubr.bf16.mxu1 %v3947_v16  ;;  %3720 = vmatprep.mubr.bf16.mxu0 %v3948_v17 }
 0x13b   : > { %3641 = vmatmul.mubr.bf16.gmra.mxu1 %v3949_v18  ;;  %3721 = vmatmul.mubr.bf16.gmra.mxu0 %v3950_v19 }
 0x13c   : > { %3644 = vmatprep.mubr.bf16.mxu1 %v3951_v20  ;;  %3724 = vmatprep.mubr.bf16.mxu0 %v3952_v21 }
 0x143   : > { %3645 = vmatmul.mubr.bf16.gmra.mxu1 %v3953_v22  ;;  %3725 = vmatmul.mubr.bf16.gmra.mxu0 %v3954_v23 }
 0x144   : > { %3648 = vmatprep.mubr.bf16.mxu1 %v3955_v24  ;;  %3728 = vmatprep.mubr.bf16.mxu0 %v3956_v25 }
 0x14b   : > { %3649 = vmatmul.mubr.bf16.gmra.mxu1 %v3957_v26  ;;  %3729 = vmatmul.mubr.bf16.gmra.mxu0 %v3958_v27 }
 0x14c   : > { %3652 = vmatprep.mubr.bf16.mxu1 %v3959_v28  ;;  %3732 = vmatprep.mubr.bf16.mxu0 %v3960_v29 }
 0x153   : > { %3653 = vmatmul.mubr.bf16.gmra.mxu1 %v3961_v30  ;;  %3733 = vmatmul.mubr.bf16.gmra.mxu0 %v3962_v31 }
 0x154   : > { %3656 = vmatprep.mubr.bf16.mxu1 %v3963_v32  ;;  %3736 = vmatprep.mubr.bf16.mxu0 %v3964_v33 }
 0x15b   : > { %3657 = vmatmul.mubr.bf16.gmra.mxu1 %v3965_v34  ;;  %3737 = vmatmul.mubr.bf16.gmra.mxu0 %v3966_v35 }
 0x15c   : > { %3660 = vmatprep.mubr.bf16.mxu1 %v3967_v36  ;;  %3740 = vmatprep.mubr.bf16.mxu0 %v3968_v37 }
 0x163   : > { %3661 = vmatmul.mubr.bf16.gmra.mxu1 %v3969_v38  ;;  %3741 = vmatmul.mubr.bf16.gmra.mxu0 %v3970_v39 }
 0x164   : > { %3664 = vmatprep.mubr.bf16.mxu1 %v3971_v40  ;;  %3744 = vmatprep.mubr.bf16.mxu0 %v3972_v41 }
 0x16b   : > { %3665 = vmatmul.mubr.bf16.gmra.mxu1 %v3973_v42  ;;  %3745 = vmatmul.mubr.bf16.gmra.mxu0 %v3974_v43 }
 0x16c   : > { %3668 = vmatprep.mubr.bf16.mxu1 %v3975_v44  ;;  %3748 = vmatprep.mubr.bf16.mxu0 %v3976_v45 }
 0x173   : > { %3669 = vmatmul.mubr.bf16.gmra.mxu1 %v3977_v46  ;;  %3749 = vmatmul.mubr.bf16.gmra.mxu0 %v3978_v47 }
 0x174   : > { %3672 = vmatprep.mubr.bf16.mxu1 %v3979_v48  ;;  %3752 = vmatprep.mubr.bf16.mxu0 %v3980_v49 }
 0x17b   : > { %3673 = vmatmul.mubr.bf16.gmra.mxu1 %v3981_v50  ;;  %3753 = vmatmul.mubr.bf16.gmra.mxu0 %v3982_v51 }
 0x17c   : > { %3676 = vmatprep.mubr.bf16.mxu1 %v3983_v52  ;;  %3756 = vmatprep.mubr.bf16.mxu0 %v3984_v53 }
 0x183   : > { %3677 = vmatmul.mubr.bf16.gmra.mxu1 %v3985_v54  ;;  %3757 = vmatmul.mubr.bf16.gmra.mxu0 %v3986_v55 }
 0x18b   : > { %v4637_v56 = vpop.f32.mrf.mxu0  ;;  %v4639_v57 = vpop.f32.mrf.mxu1 }
 0x18d   : > { %v4641_v58 = vpop.f32.mrf.mxu0  ;;  %v4643_v59 = vpop.f32.mrf.mxu1 }
 0x18f   : > { %v4645_v60 = vpop.f32.mrf.mxu0  ;;  %v4647_v61 = vpop.f32.mrf.mxu1 }
 0x191   : > { %v4649_v62 = vpop.f32.mrf.mxu0  ;;  %v4651_v63 = vpop.f32.mrf.mxu1 }
 0x193   : > { %v4653_v0 = vpop.f32.mrf.mxu0  ;;  %v4655_v1 = vpop.f32.mrf.mxu1 }
 0x195   : > { %v4657_v2 = vpop.f32.mrf.mxu0  ;;  %v4659_v3 = vpop.f32.mrf.mxu1 }
 0x197   : > { %v4661_v4 = vpop.f32.mrf.mxu0  ;;  %v4663_v5 = vpop.f32.mrf.mxu1 }
 0x199   : > { %v4665_v6 = vpop.f32.mrf.mxu0  ;;  %v4667_v7 = vpop.f32.mrf.mxu1 }
 0x19b   : > { %v4669_v8 = vpop.f32.mrf.mxu0  ;;  %v4671_v9 = vpop.f32.mrf.mxu1 }
 0x19d   : > { %v4673_v10 = vpop.f32.mrf.mxu0  ;;  %v4675_v11 = vpop.f32.mrf.mxu1 }
 0x19f   : > { %v4677_v12 = vpop.f32.mrf.mxu0  ;;  %v4679_v13 = vpop.f32.mrf.mxu1 }
 0x1a1   : > { %v4681_v14 = vpop.f32.mrf.mxu0  ;;  %v4683_v15 = vpop.f32.mrf.mxu1 }
 0x1a3   : > { %v4685_v16 = vpop.f32.mrf.mxu0  ;;  %v4687_v17 = vpop.f32.mrf.mxu1 }
 0x1a4   : > { %5039 = vst [vmem:[#allocation23_spill] sm:$0xff] %v4687_v17 }
 0x1a5   : > { %v4689_v18 = vpop.f32.mrf.mxu0  ;;  %v4691_v19 = vpop.f32.mrf.mxu1 }
 0x1a6   : > { %5040 = vst [vmem:[#allocation24_spill] sm:$0xff] %v4691_v19 }
 0x1a7   : > { %v4693_v20 = vpop.f32.mrf.mxu0  ;;  %v4695_v21 = vpop.f32.mrf.mxu1 }
 0x1a8   : > { %5041 = vst [vmem:[#allocation25_spill] sm:$0xff] %v4695_v21 }
 0x1a9   : > { %v4697_v22 = vpop.f32.mrf.mxu0  ;;  %v4699_v23 = vpop.f32.mrf.mxu1 }
 0x1aa   : > { %5042 = vst [vmem:[#allocation26_spill] sm:$0xff] %v4699_v23 }
 0x1ab   : > { %v4701_v24 = vpop.f32.mrf.mxu0  ;;  %v4703_v25 = vpop.f32.mrf.mxu1 }
 0x1ac   : > { %5043 = vst [vmem:[#allocation27_spill] sm:$0xff] %v4703_v25 }
 0x1ad   : > { %v4705_v26 = vpop.f32.mrf.mxu0  ;;  %v4707_v27 = vpop.f32.mrf.mxu1 }
 0x1ae   : > { %5044 = vst [vmem:[#allocation28_spill] sm:$0xff] %v4707_v27 }
 0x1af   : > { %v4709_v28 = vpop.f32.mrf.mxu0  ;;  %v4711_v29 = vpop.f32.mrf.mxu1 }
 0x1b0   : > { %5045 = vst [vmem:[#allocation29_spill] sm:$0xff] %v4711_v29 }
 0x1b1   : > { %v4713_v30 = vpop.f32.mrf.mxu0  ;;  %v4715_v31 = vpop.f32.mrf.mxu1 }
 0x1b2   : > { %5046 = vst [vmem:[#allocation30_spill] sm:$0xff] %v4715_v31 }
 0x1b3   : > { %v4717_v32 = vpop.f32.mrf.mxu0  ;;  %v4719_v33 = vpop.f32.mrf.mxu1 }
 0x1b4   : > { %5047 = vst [vmem:[#allocation31_spill] sm:$0xff] %v4719_v33 }
 0x1b5   : > { %v4721_v34 = vpop.f32.mrf.mxu0  ;;  %v4723_v35 = vpop.f32.mrf.mxu1 }
 0x1b6   : > { %5048 = vst [vmem:[#allocation32_spill] sm:$0xff] %v4723_v35 }
 0x1b7   : > { %v4725_v36 = vpop.f32.mrf.mxu0  ;;  %v4727_v37 = vpop.f32.mrf.mxu1 }
 0x1b8   : > { %5049 = vst [vmem:[#allocation33_spill] sm:$0xff] %v4727_v37 }
 0x1b9   : > { %v4729_v38 = vpop.f32.mrf.mxu0  ;;  %v4731_v39 = vpop.f32.mrf.mxu1 }
 0x1ba   : > { %5050 = vst [vmem:[#allocation34_spill] sm:$0xff] %v4731_v39 }
 0x1bb   : > { %v4733_v40 = vpop.f32.mrf.mxu0  ;;  %v4735_v41 = vpop.f32.mrf.mxu1 }
 0x1bc   : > { %5051 = vst [vmem:[#allocation35_spill] sm:$0xff] %v4735_v41 }
 0x1bd   : > { %v4737_v42 = vpop.f32.mrf.mxu0  ;;  %v4739_v43 = vpop.f32.mrf.mxu1 }
 0x1be   : > { %5052 = vst [vmem:[#allocation36_spill] sm:$0xff] %v4739_v43 }
 0x1bf   : > { %v4741_v44 = vpop.f32.mrf.mxu0  ;;  %v4743_v45 = vpop.f32.mrf.mxu1 }
 0x1c0   : > { %5053 = vst [vmem:[#allocation37_spill] sm:$0xff] %v4743_v45 }
 0x1c1   : > { %v4745_v46 = vpop.f32.mrf.mxu0  ;;  %v4747_v47 = vpop.f32.mrf.mxu1 }
 0x1c2   : > { %5054 = vst [vmem:[#allocation38_spill] sm:$0xff] %v4747_v47 }
 0x1c3   : > { %v4749_v48 = vpop.f32.mrf.mxu0  ;;  %v4751_v49 = vpop.f32.mrf.mxu1 }
 0x1c4   : > { %5055 = vst [vmem:[#allocation39_spill] sm:$0xff] %v4751_v49 }
 0x1c5   : > { %v4753_v50 = vpop.f32.mrf.mxu0  ;;  %v4755_v51 = vpop.f32.mrf.mxu1 }
 0x1c6   : > { %5056 = vst [vmem:[#allocation40_spill] sm:$0xff] %v4755_v51  ;;  %v4770_v51 = vld [vmem:[%s4989_s6] ss:$0 sm:$0xff] }
 0x1c7   : > { %v4757_v52 = vpop.f32.mrf.mxu0  ;;  %v4759_v53 = vpop.f32.mrf.mxu1 }
 0x1c8   : > { %5057 = vst [vmem:[#allocation41_spill] sm:$0xff] %v4759_v53 }
 0x1c9   : > { %v4761_v54 = vpop.f32.mrf.mxu0  ;;  %v4763_v55 = vpop.f32.mrf.mxu1 }
 0x1ca   : > { %5058 = vst [vmem:[#allocation42_spill] sm:$0xff] %v4763_v55 }
 0x1cb   : > { %v3618_v45 = vpop.f32.mrf.mxu1  ;;  %v3698_v43 = vpop.f32.mrf.mxu0 }
 0x1cc   : > { %v1395_v47 = vadd.f32 %v3618_v45, %v4637_v56 }
 0x1cd   : > { %v1386_v41 = vpop.f32.mrf.mxu1  ;;  %v1995_v39 = vpop.f32.mrf.mxu0 }
 0x1ce   : > { %v2252_v37 = vadd.f32 %v3698_v43, %v1395_v47  ;;  %v1387_v49 = vadd.f32 %v1386_v41, %v4641_v58 }
 0x1cf   : > { %v3619_v35 = vpop.f32.mrf.mxu1  ;;  %v3699_v53 = vpop.f32.mrf.mxu0 }
 0x1d0   : > { %v2250_v33 = vadd.f32 %v1995_v39, %v1387_v49  ;;  %v1398_v31 = vadd.f32 %v3619_v35, %v4645_v60  ;;  %v2323_v27 = vadd.f32 %v4770_v51, %v2252_v37 }
 0x1d1   : > { %v1389_v55 = vpop.f32.mrf.mxu1  ;;  %v1998_v29 = vpop.f32.mrf.mxu0 }
 0x1d2   : > { %v2253_v56 = vadd.f32 %v3699_v53, %v1398_v31  ;;  %v1390_v45 = vadd.f32 %v1389_v55, %v4649_v62  ;;  %v2321_v58 = vadd.f32 %v4770_v51, %v2250_v33  ;;  %v2387_v60 = vmax.f32 %v2323_v27, 0.0 }
 0x1d3   : > { %v3622_v43 = vpop.f32.mrf.mxu1  ;;  %v3702_v47 = vpop.f32.mrf.mxu0 }
 0x1d4   : > { %v2324_v41 = vadd.f32 %v4770_v51, %v2253_v56  ;;  %v2251_v25 = vadd.f32 %v1998_v29, %v1390_v45  ;;  %v1411_v23 = vadd.f32 %v3622_v43, %v4653_v0  ;;  %v2385_v55 = vmax.f32 %v2321_v58, 0.0 }
 0x1d5   : > { %v1402_v21 = vpop.f32.mrf.mxu1  ;;  %v2011_v39 = vpop.f32.mrf.mxu0 }
 0x1d6   : > { %v2388_v35 = vmax.f32 %v2324_v41, 0.0  ;;  %v2322_v49 = vadd.f32 %v4770_v51, %v2251_v25  ;;  %v1403_v31 = vadd.f32 %v1402_v21, %v4657_v2  ;;  %v2256_v37 = vadd.f32 %v3702_v47, %v1411_v23 }
 0x1d7   : > { %v3623_v62 = vpop.f32.mrf.mxu1  ;;  %v3703_v53 = vpop.f32.mrf.mxu0 }
 0x1d8   : > { %v3217_v19 = vpack.c.bf16 %v2388_v35, %v2387_v60  ;;  %v2386_v33 = vmax.f32 %v2322_v49, 0.0  ;;  %v2254_v17 = vadd.f32 %v2011_v39, %v1403_v31  ;;  %v1414_v29 = vadd.f32 %v3623_v62, %v4661_v4 }
 0x1d9   : > { %v1405_v56 = vpop.f32.mrf.mxu1  ;;  %v2014_v0 = vpop.f32.mrf.mxu0  ;;  %v2327_v2 = vadd.f32 %v4770_v51, %v2256_v37 }
 0x1da   : > { %3369 = vst [vmem:[%s4782_s5 + $0x8] sm:$0xff] %v3217_v19   ;;  %v3212_v27 = vpack.c.bf16 %v2386_v33, %v2385_v55  ;;  %v1406_v25 = vadd.f32 %v1405_v56, %v4665_v6  ;;  %v2257_v21 = vadd.f32 %v3703_v53, %v1414_v29  ;;  %v2325_v43 = vadd.f32 %v4770_v51, %v2254_v17 }
 0x1db   : > { %v3626_v23 = vpop.f32.mrf.mxu1  ;;  %v3706_v45 = vpop.f32.mrf.mxu0  ;;  %v2391_v35 = vmax.f32 %v2327_v2, 0.0 }
 0x1dc   : > { %3213 = vst [vmem:[%s4782_s5] sm:$0xff] %v3212_v27   ;;  %v2255_v47 = vadd.f32 %v2014_v0, %v1406_v25  ;;  %v1427_v4 = vadd.f32 %v3626_v23, %v4669_v8  ;;  %v2328_v58 = vadd.f32 %v4770_v51, %v2257_v21  ;;  %v2389_v62 = vmax.f32 %v2325_v43, 0.0 }
 0x1dd   : > { %v1418_v41 = vpop.f32.mrf.mxu1  ;;  %v2027_v39 = vpop.f32.mrf.mxu0 }
 0x1de   : > { %v2326_v19 = vadd.f32 %v4770_v51, %v2255_v47  ;;  %v2260_v60 = vadd.f32 %v3706_v45, %v1427_v4  ;;  %v1419_v6 = vadd.f32 %v1418_v41, %v4673_v10  ;;  %v2392_v49 = vmax.f32 %v2328_v58, 0.0 }
 0x1df   : > { %v3627_v31 = vpop.f32.mrf.mxu1  ;;  %v3707_v37 = vpop.f32.mrf.mxu0 }
 0x1e0   : > { %v2390_v17 = vmax.f32 %v2326_v19, 0.0  ;;  %v1430_v53 = vadd.f32 %v3627_v31, %v4677_v12  ;;  %v3227_v8 = vpack.c.bf16 %v2392_v49, %v2391_v35  ;;  %v2258_v55 = vadd.f32 %v2027_v39, %v1419_v6 }
 0x1e1   : > { %v1421_v33 = vpop.f32.mrf.mxu1  ;;  %v2030_v29 = vpop.f32.mrf.mxu0  ;;  %v2331_v0 = vadd.f32 %v4770_v51, %v2260_v60 }
 0x1e2   : > { %v3222_v56 = vpack.c.bf16 %v2390_v17, %v2389_v62  ;;  %v2261_v27 = vadd.f32 %v3707_v37, %v1430_v53  ;;  %3371 = vst [vmem:[%s4782_s5 + $0x18] sm:$0xff] %v3227_v8   ;;  %v1422_v10 = vadd.f32 %v1421_v33, %v4681_v14  ;;  %v2329_v12 = vadd.f32 %v4770_v51, %v2258_v55 }
 0x1e3   : > { %v3630_v25 = vpop.f32.mrf.mxu1  ;;  %v3710_v2 = vpop.f32.mrf.mxu0  ;;  %v2395_v4 = vmax.f32 %v2331_v0, 0.0 }
 0x1e4   : > { %3370 = vst [vmem:[%s4782_s5 + $0x10] sm:$0xff] %v3222_v56   ;;  %v2332_v21 = vadd.f32 %v4770_v51, %v2261_v27  ;;  %v1443_v23 = vadd.f32 %v3630_v25, %v4685_v16  ;;  %v2259_v45 = vadd.f32 %v2030_v29, %v1422_v10  ;;  %v2393_v16 = vmax.f32 %v2329_v12, 0.0 }
 0x1e5   : > { %v1434_v43 = vpop.f32.mrf.mxu1  ;;  %v2043_v47 = vpop.f32.mrf.mxu0 }
 0x1e6   : > { %v2396_v58 = vmax.f32 %v2332_v21, 0.0  ;;  %v2264_v41 = vadd.f32 %v3710_v2, %v1443_v23  ;;  %v1435_v39 = vadd.f32 %v1434_v43, %v4689_v18  ;;  %v2330_v14 = vadd.f32 %v4770_v51, %v2259_v45 }
 0x1e7   : > { %v3631_v19 = vpop.f32.mrf.mxu1  ;;  %v3711_v60 = vpop.f32.mrf.mxu0 }
 0x1e8   : > { %v3237_v6 = vpack.c.bf16 %v2396_v58, %v2395_v4  ;;  %v2262_v35 = vadd.f32 %v2043_v47, %v1435_v39  ;;  %v1446_v49 = vadd.f32 %v3631_v19, %v4693_v20  ;;  %v2394_v31 = vmax.f32 %v2330_v14, 0.0 }
 0x1e9   : > { %v1437_v37 = vpop.f32.mrf.mxu1  ;;  %v2046_v62 = vpop.f32.mrf.mxu0  ;;  %v2335_v17 = vadd.f32 %v4770_v51, %v2264_v41 }
 0x1ea   : > { %3373 = vst [vmem:[%s4782_s5 + $0x28] sm:$0xff] %v3237_v6   ;;  %v2265_v53 = vadd.f32 %v3711_v60, %v1446_v49  ;;  %v1438_v8 = vadd.f32 %v1437_v37, %v4697_v22  ;;  %v3232_v18 = vpack.c.bf16 %v2394_v31, %v2393_v16  ;;  %v2333_v29 = vadd.f32 %v4770_v51, %v2262_v35 }
 0x1eb   : > { %v3634_v55 = vpop.f32.mrf.mxu1  ;;  %v3714_v33 = vpop.f32.mrf.mxu0  ;;  %v2399_v25 = vmax.f32 %v2335_v17, 0.0 }
 0x1ec   : > { %v2336_v56 = vadd.f32 %v4770_v51, %v2265_v53  ;;  %v2263_v0 = vadd.f32 %v2046_v62, %v1438_v8  ;;  %v1459_v20 = vadd.f32 %v3634_v55, %v4701_v24  ;;  %3372 = vst [vmem:[%s4782_s5 + $0x20] sm:$0xff] %v3232_v18   ;;  %v2397_v43 = vmax.f32 %v2333_v29, 0.0 }
 0x1ed   : > { %v1450_v27 = vpop.f32.mrf.mxu1  ;;  %v2059_v10 = vpop.f32.mrf.mxu0 }
 0x1ee   : > { %v2400_v2 = vmax.f32 %v2336_v56, 0.0  ;;  %v2334_v21 = vadd.f32 %v4770_v51, %v2263_v0  ;;  %v1451_v22 = vadd.f32 %v1450_v27, %v4705_v26  ;;  %v2268_v23 = vadd.f32 %v3714_v33, %v1459_v20 }
 0x1ef   : > { %v3635_v12 = vpop.f32.mrf.mxu1  ;;  %v3715_v45 = vpop.f32.mrf.mxu0 }
 0x1f0   : > { %v3247_v47 = vpack.c.bf16 %v2400_v2, %v2399_v25  ;;  %v2398_v4 = vmax.f32 %v2334_v21, 0.0  ;;  %v2266_v58 = vadd.f32 %v2059_v10, %v1451_v22  ;;  %v1462_v24 = vadd.f32 %v3635_v12, %v4709_v28 }
 0x1f1   : > { %v1453_v41 = vpop.f32.mrf.mxu1  ;;  %v2062_v39 = vpop.f32.mrf.mxu0  ;;  %v2339_v60 = vadd.f32 %v4770_v51, %v2268_v23 }
 0x1f2   : > { %3375 = vst [vmem:[%s4782_s5 + $0x38] sm:$0xff] %v3247_v47   ;;  %v3242_v14 = vpack.c.bf16 %v2398_v4, %v2397_v43  ;;  %v1454_v19 = vadd.f32 %v1453_v41, %v4713_v30  ;;  %v2269_v6 = vadd.f32 %v3715_v45, %v1462_v24  ;;  %v2337_v49 = vadd.f32 %v4770_v51, %v2266_v58 }
 0x1f3   : > { %v3638_v26 = vpop.f32.mrf.mxu1  ;;  %v3718_v35 = vpop.f32.mrf.mxu0  ;;  %v2403_v8 = vmax.f32 %v2339_v60, 0.0 }
 0x1f4   : > { %3374 = vst [vmem:[%s4782_s5 + $0x30] sm:$0xff] %v3242_v14   ;;  %v2267_v16 = vadd.f32 %v2062_v39, %v1454_v19  ;;  %v1475_v31 = vadd.f32 %v3638_v26, %v4717_v32  ;;  %v2340_v37 = vadd.f32 %v4770_v51, %v2269_v6  ;;  %v2401_v29 = vmax.f32 %v2337_v49, 0.0 }
 0x1f5   : > { %v1466_v28 = vpop.f32.mrf.mxu1  ;;  %v2075_v62 = vpop.f32.mrf.mxu0 }
 0x1f6   : > { %v2338_v17 = vadd.f32 %v4770_v51, %v2267_v16  ;;  %v2272_v53 = vadd.f32 %v3718_v35, %v1475_v31  ;;  %v1467_v30 = vadd.f32 %v1466_v28, %v4721_v34  ;;  %v2404_v18 = vmax.f32 %v2340_v37, 0.0 }
 0x1f7   : > { %v3639_v55 = vpop.f32.mrf.mxu1  ;;  %v3719_v33 = vpop.f32.mrf.mxu0 }
 0x1f8   : > { %v2402_v56 = vmax.f32 %v2338_v17, 0.0  ;;  %v1478_v0 = vadd.f32 %v3639_v55, %v4725_v36  ;;  %v3257_v32 = vpack.c.bf16 %v2404_v18, %v2403_v8  ;;  %v2270_v20 = vadd.f32 %v2075_v62, %v1467_v30 }
 0x1f9   : > { %v1469_v27 = vpop.f32.mrf.mxu1  ;;  %v2078_v10 = vpop.f32.mrf.mxu0  ;;  %v2343_v2 = vadd.f32 %v4770_v51, %v2272_v53 }
 0x1fa   : > { %v3252_v25 = vpack.c.bf16 %v2402_v56, %v2401_v29  ;;  %v2273_v21 = vadd.f32 %v3719_v33, %v1478_v0  ;;  %3377 = vst [vmem:[%s4782_s5 + $0x48] sm:$0xff] %v3257_v32   ;;  %v1470_v34 = vadd.f32 %v1469_v27, %v4729_v38  ;;  %v2341_v36 = vadd.f32 %v4770_v51, %v2270_v20 }
 0x1fb   : > { %v3642_v22 = vpop.f32.mrf.mxu1  ;;  %v3722_v23 = vpop.f32.mrf.mxu0  ;;  %v2407_v58 = vmax.f32 %v2343_v2, 0.0 }
 0x1fc   : > { %3376 = vst [vmem:[%s4782_s5 + $0x40] sm:$0xff] %v3252_v25   ;;  %v2344_v12 = vadd.f32 %v4770_v51, %v2273_v21  ;;  %v1491_v45 = vadd.f32 %v3642_v22, %v4733_v40  ;;  %v2271_v43 = vadd.f32 %v2078_v10, %v1470_v34  ;;  %v2405_v40 = vmax.f32 %v2341_v36, 0.0 }
 0x1fd   : > { %v1482_v47 = vpop.f32.mrf.mxu1  ;;  %v2091_v4 = vpop.f32.mrf.mxu0 }
 0x1fe   : > { %v2408_v24 = vmax.f32 %v2344_v12, 0.0  ;;  %v2276_v41 = vadd.f32 %v3722_v23, %v1491_v45  ;;  %v1483_v39 = vadd.f32 %v1482_v47, %v4737_v42  ;;  %v2342_v38 = vadd.f32 %v4770_v51, %v2271_v43 }
 0x1ff   : > { %v3643_v14 = vpop.f32.mrf.mxu1  ;;  %v3723_v19 = vpop.f32.mrf.mxu0 }
 0x200   : > { %v3267_v60 = vpack.c.bf16 %v2408_v24, %v2407_v58  ;;  %v2274_v6 = vadd.f32 %v2091_v4, %v1483_v39  ;;  %v1494_v26 = vadd.f32 %v3643_v14, %v4741_v44  ;;  %v2406_v35 = vmax.f32 %v2342_v38, 0.0 }
 0x201   : > { %v1485_v49 = vpop.f32.mrf.mxu1  ;;  %v2094_v16 = vpop.f32.mrf.mxu0  ;;  %v2347_v31 = vadd.f32 %v4770_v51, %v2276_v41 }
 0x202   : > { %3379 = vst [vmem:[%s4782_s5 + $0x58] sm:$0xff] %v3267_v60   ;;  %v2277_v37 = vadd.f32 %v3723_v19, %v1494_v26  ;;  %v1486_v28 = vadd.f32 %v1485_v49, %v4745_v46  ;;  %v3262_v42 = vpack.c.bf16 %v2406_v35, %v2405_v40  ;;  %v2345_v53 = vadd.f32 %v4770_v51, %v2274_v6 }
 0x203   : > { %v3646_v62 = vpop.f32.mrf.mxu1  ;;  %v3726_v17 = vpop.f32.mrf.mxu0  ;;  %v2411_v33 = vmax.f32 %v2347_v31, 0.0 }
 0x204   : > { %v2348_v30 = vadd.f32 %v4770_v51, %v2277_v37  ;;  %v2275_v8 = vadd.f32 %v2094_v16, %v1486_v28  ;;  %v1507_v44 = vadd.f32 %v3646_v62, %v4749_v48  ;;  %3378 = vst [vmem:[%s4782_s5 + $0x50] sm:$0xff] %v3262_v42   ;;  %v2409_v27 = vmax.f32 %v2345_v53, 0.0 }
 0x205   : > { %v1498_v18 = vpop.f32.mrf.mxu1  ;;  %v2107_v55 = vpop.f32.mrf.mxu0 }
 0x206   : > { %v2412_v29 = vmax.f32 %v2348_v30, 0.0  ;;  %v2346_v56 = vadd.f32 %v4770_v51, %v2275_v8  ;;  %v1499_v46 = vadd.f32 %v1498_v18, %v4753_v50  ;;  %v2280_v0 = vadd.f32 %v3726_v17, %v1507_v44 }
 0x207   : > { %v3647_v32 = vpop.f32.mrf.mxu1  ;;  %v3727_v20 = vpop.f32.mrf.mxu0 }
 0x208   : > { %v3277_v10 = vpack.c.bf16 %v2412_v29, %v2411_v33  ;;  %v2410_v25 = vmax.f32 %v2346_v56, 0.0  ;;  %v2278_v2 = vadd.f32 %v2107_v55, %v1499_v46  ;;  %v1510_v48 = vadd.f32 %v3647_v32, %v4757_v52 }
 0x209   : > { %v1501_v21 = vpop.f32.mrf.mxu1  ;;  %v2110_v34 = vpop.f32.mrf.mxu0  ;;  %v2351_v12 = vadd.f32 %v4770_v51, %v2280_v0 }
 0x20a   : > { %3381 = vst [vmem:[%s4782_s5 + $0x68] sm:$0xff] %v3277_v10   ;;  %v3272_v22 = vpack.c.bf16 %v2410_v25, %v2409_v27  ;;  %v1502_v23 = vadd.f32 %v1501_v21, %v4761_v54  ;;  %v2281_v45 = vadd.f32 %v3727_v20, %v1510_v48  ;;  %v2349_v43 = vadd.f32 %v4770_v51, %v2278_v2 }
 0x20b   : > { %v3650_v50 = vpop.f32.mrf.mxu1  ;;  %v3730_v36 = vpop.f32.mrf.mxu0  ;;  %v2415_v38 = vmax.f32 %v2351_v12, 0.0 }
 0x20c   : > { %3380 = vst [vmem:[%s4782_s5 + $0x60] sm:$0xff] %v3272_v22   ;;  %v2279_v47 = vadd.f32 %v2110_v34, %v1502_v23  ;;  %v1523_v4 = vadd.f32 %v3650_v50, %v4639_v57  ;;  %v2352_v58 = vadd.f32 %v4770_v51, %v2281_v45  ;;  %v2413_v6 = vmax.f32 %v2349_v43, 0.0 }
 0x20d   : > { %v1514_v52 = vpop.f32.mrf.mxu1  ;;  %v2123_v24 = vpop.f32.mrf.mxu0 }
 0x20e   : > { %v2350_v41 = vadd.f32 %v4770_v51, %v2279_v47  ;;  %v2284_v39 = vadd.f32 %v3730_v36, %v1523_v4  ;;  %v1515_v54 = vadd.f32 %v1514_v52, %v4643_v59  ;;  %v2416_v14 = vmax.f32 %v2352_v58, 0.0 }
 0x20f   : > { %v3651_v19 = vpop.f32.mrf.mxu1  ;;  %v3731_v60 = vpop.f32.mrf.mxu0 }
 0x210   : > { %v2414_v26 = vmax.f32 %v2350_v41, 0.0  ;;  %v1526_v40 = vadd.f32 %v3651_v19, %v4647_v61  ;;  %v3287_v57 = vpack.c.bf16 %v2416_v14, %v2415_v38  ;;  %v2282_v35 = vadd.f32 %v2123_v24, %v1515_v54 }
 0x211   : > { %v1517_v49 = vpop.f32.mrf.mxu1  ;;  %v2126_v16 = vpop.f32.mrf.mxu0  ;;  %v2355_v37 = vadd.f32 %v4770_v51, %v2284_v39 }
 0x212   : > { %v3282_v31 = vpack.c.bf16 %v2414_v26, %v2413_v6  ;;  %v2285_v28 = vadd.f32 %v3731_v60, %v1526_v40  ;;  %3383 = vst [vmem:[%s4782_s5 + $0x78] sm:$0xff] %v3287_v57   ;;  %v1518_v59 = vadd.f32 %v1517_v49, %v4651_v63  ;;  %v2353_v61 = vadd.f32 %v4770_v51, %v2282_v35 }
 0x213   : > { %v3654_v42 = vpop.f32.mrf.mxu1  ;;  %v3734_v62 = vpop.f32.mrf.mxu0  ;;  %v2419_v18 = vmax.f32 %v2355_v37, 0.0 }
 0x214   : > { %3382 = vst [vmem:[%s4782_s5 + $0x70] sm:$0xff] %v3282_v31   ;;  %v2356_v17 = vadd.f32 %v4770_v51, %v2285_v28  ;;  %v1539_v53 = vadd.f32 %v3654_v42, %v4655_v1  ;;  %v2283_v30 = vadd.f32 %v2126_v16, %v1518_v59  ;;  %v2417_v1 = vmax.f32 %v2353_v61, 0.0  ;;  %v5059_v16 = vld [vmem:[#allocation23_spill] sm:$0xff] }
 0x215   : > { %v1530_v8 = vpop.f32.mrf.mxu1  ;;  %v2139_v44 = vpop.f32.mrf.mxu0 }
 0x216   : > { %v2420_v55 = vmax.f32 %v2356_v17, 0.0  ;;  %v2288_v33 = vadd.f32 %v3734_v62, %v1539_v53  ;;  %v1531_v29 = vadd.f32 %v1530_v8, %v4659_v3  ;;  %v2354_v63 = vadd.f32 %v4770_v51, %v2283_v30  ;;  %v5060_v62 = vld [vmem:[#allocation24_spill] sm:$0xff] }
 0x217   : > { %v3655_v56 = vpop.f32.mrf.mxu1  ;;  %v3735_v46 = vpop.f32.mrf.mxu0 }
 0x218   : > { %v3297_v0 = vpack.c.bf16 %v2420_v55, %v2419_v18  ;;  %v2286_v32 = vadd.f32 %v2139_v44, %v1531_v29  ;;  %v1542_v20 = vadd.f32 %v3655_v56, %v4663_v5  ;;  %v2418_v27 = vmax.f32 %v2354_v63, 0.0  ;;  %v5061_v18 = vld [vmem:[#allocation25_spill] sm:$0xff] }
 0x219   : > { %v1533_v10 = vpop.f32.mrf.mxu1  ;;  %v2142_v25 = vpop.f32.mrf.mxu0  ;;  %v2359_v2 = vadd.f32 %v4770_v51, %v2288_v33 }
 0x21a   : > { %3385 = vst [vmem:[%s4782_s5 + $0x88] sm:$0xff] %v3297_v0   ;;  %v2289_v48 = vadd.f32 %v3735_v46, %v1542_v20  ;;  %v1534_v21 = vadd.f32 %v1533_v10, %v4667_v7  ;;  %v3292_v3 = vpack.c.bf16 %v2418_v27, %v2417_v1  ;;  %v2357_v23 = vadd.f32 %v4770_v51, %v2286_v32  ;;  %v5062_v20 = vld [vmem:[#allocation26_spill] sm:$0xff] }
 0x21b   : > { %v3658_v34 = vpop.f32.mrf.mxu1  ;;  %v3738_v22 = vpop.f32.mrf.mxu0  ;;  %v2423_v43 = vmax.f32 %v2359_v2, 0.0  ;;  %v5063_v2 = vld [vmem:[#allocation27_spill] sm:$0xff] }
 0x21c   : > { %v2360_v12 = vadd.f32 %v4770_v51, %v2289_v48  ;;  %v2287_v45 = vadd.f32 %v2142_v25, %v1534_v21  ;;  %v1555_v5 = vadd.f32 %v3658_v34, %v4671_v9  ;;  %3384 = vst [vmem:[%s4782_s5 + $0x80] sm:$0xff] %v3292_v3   ;;  %v2421_v41 = vmax.f32 %v2357_v23, 0.0 }
 0x21d   : > { %v1546_v50 = vpop.f32.mrf.mxu1  ;;  %v2155_v36 = vpop.f32.mrf.mxu0 }
 0x21e   : > { %v2424_v47 = vmax.f32 %v2360_v12, 0.0  ;;  %v2358_v4 = vadd.f32 %v4770_v51, %v2287_v45  ;;  %v1547_v7 = vadd.f32 %v1546_v50, %v4675_v11  ;;  %v2292_v58 = vadd.f32 %v3738_v22, %v1555_v5  ;;  %v5064_v5 = vld [vmem:[#allocation28_spill] sm:$0xff] }
 0x21f   : > { %v3659_v52 = vpop.f32.mrf.mxu1  ;;  %v3739_v24 = vpop.f32.mrf.mxu0 }
 0x220   : > { %v3307_v39 = vpack.c.bf16 %v2424_v47, %v2423_v43  ;;  %v2422_v54 = vmax.f32 %v2358_v4, 0.0  ;;  %v2290_v38 = vadd.f32 %v2155_v36, %v1547_v7  ;;  %v1558_v9 = vadd.f32 %v3659_v52, %v4679_v13 }
 0x221   : > { %v1549_v14 = vpop.f32.mrf.mxu1  ;;  %v2158_v19 = vpop.f32.mrf.mxu0  ;;  %v2363_v26 = vadd.f32 %v4770_v51, %v2292_v58  ;;  %v5065_v58 = vld [vmem:[#allocation29_spill] sm:$0xff] }
 0x222   : > { %3387 = vst [vmem:[%s4782_s5 + $0x98] sm:$0xff] %v3307_v39   ;;  %v3302_v60 = vpack.c.bf16 %v2422_v54, %v2421_v41  ;;  %v1550_v6 = vadd.f32 %v1549_v14, %v4683_v15  ;;  %v2293_v40 = vadd.f32 %v3739_v24, %v1558_v9  ;;  %v2361_v35 = vadd.f32 %v4770_v51, %v2290_v38  ;;  %v5066_v14 = vld [vmem:[#allocation30_spill] sm:$0xff] }
 0x223   : > { %v3662_v11 = vpop.f32.mrf.mxu1  ;;  %v3742_v57 = vpop.f32.mrf.mxu0  ;;  %v2427_v17 = vmax.f32 %v2363_v26, 0.0 }
 0x224   : > { %3386 = vst [vmem:[%s4782_s5 + $0x90] sm:$0xff] %v3302_v60   ;;  %v2291_v49 = vadd.f32 %v2158_v19, %v1550_v6  ;;  %v1571_v31 = vadd.f32 %v3662_v11, %v5059_v16  ;;  %v2364_v37 = vadd.f32 %v4770_v51, %v2293_v40  ;;  %v2425_v8 = vmax.f32 %v2361_v35, 0.0  ;;  %v5067_v35 = vld [vmem:[#allocation31_spill] sm:$0xff] }
 0x225   : > { %v1562_v13 = vpop.f32.mrf.mxu1  ;;  %v2171_v28 = vpop.f32.mrf.mxu0 }
 0x226   : > { %v2362_v59 = vadd.f32 %v4770_v51, %v2291_v49  ;;  %v2296_v42 = vadd.f32 %v3742_v57, %v1571_v31  ;;  %v1563_v15 = vadd.f32 %v1562_v13, %v5060_v62  ;;  %v2428_v53 = vmax.f32 %v2364_v37, 0.0 }
 0x227   : > { %v3663_v61 = vpop.f32.mrf.mxu1  ;;  %v3743_v30 = vpop.f32.mrf.mxu0 }
 0x228   : > { %v2426_v44 = vmax.f32 %v2362_v59, 0.0  ;;  %v1574_v55 = vadd.f32 %v3663_v61, %v5061_v18  ;;  %v3317_v33 = vpack.c.bf16 %v2428_v53, %v2427_v17  ;;  %v2294_v29 = vadd.f32 %v2171_v28, %v1563_v15  ;;  %v5068_v59 = vld [vmem:[#allocation32_spill] sm:$0xff] }
 0x229   : > { %v1565_v63 = vpop.f32.mrf.mxu1  ;;  %v2174_v56 = vpop.f32.mrf.mxu0  ;;  %v2367_v0 = vadd.f32 %v4770_v51, %v2296_v42 }
 0x22a   : > { %v3312_v46 = vpack.c.bf16 %v2426_v44, %v2425_v8  ;;  %v2297_v32 = vadd.f32 %v3743_v30, %v1574_v55  ;;  %3389 = vst [vmem:[%s4782_s5 + $0xa8] sm:$0xff] %v3317_v33   ;;  %v1566_v1 = vadd.f32 %v1565_v63, %v5062_v20  ;;  %v2365_v21 = vadd.f32 %v4770_v51, %v2294_v29  ;;  %v5069_v44 = vld [vmem:[#allocation33_spill] sm:$0xff]  ;;  %v5070_v63 = vld [vmem:[#allocation34_spill] sm:$0xff] }
 0x22b   : > { %v3666_v27 = vpop.f32.mrf.mxu1  ;;  %v3746_v10 = vpop.f32.mrf.mxu0  ;;  %v2431_v23 = vmax.f32 %v2367_v0, 0.0 }
 0x22c   : > { %3388 = vst [vmem:[%s4782_s5 + $0xa0] sm:$0xff] %v3312_v46   ;;  %v2368_v25 = vadd.f32 %v4770_v51, %v2297_v32  ;;  %v1587_v48 = vadd.f32 %v3666_v27, %v5063_v2  ;;  %v2295_v3 = vadd.f32 %v2174_v56, %v1566_v1  ;;  %v2429_v24 = vmax.f32 %v2365_v21, 0.0 }
 0x22d   : > { %v1578_v34 = vpop.f32.mrf.mxu1  ;;  %v2187_v22 = vpop.f32.mrf.mxu0 }
 0x22e   : > { %v2432_v12 = vmax.f32 %v2368_v25, 0.0  ;;  %v2300_v45 = vadd.f32 %v3746_v10, %v1587_v48  ;;  %v1579_v50 = vadd.f32 %v1578_v34, %v5064_v5  ;;  %v2366_v36 = vadd.f32 %v4770_v51, %v2295_v3  ;;  %v5071_v10 = vld [vmem:[#allocation35_spill] sm:$0xff] }
 0x22f   : > { %v3667_v43 = vpop.f32.mrf.mxu1  ;;  %v3747_v47 = vpop.f32.mrf.mxu0 }
 0x230   : > { %v3327_v4 = vpack.c.bf16 %v2432_v12, %v2431_v23  ;;  %v2298_v7 = vadd.f32 %v2187_v22, %v1579_v50  ;;  %v1590_v52 = vadd.f32 %v3667_v43, %v5065_v58  ;;  %v2430_v41 = vmax.f32 %v2366_v36, 0.0  ;;  %v5072_v22 = vld [vmem:[#allocation36_spill] sm:$0xff] }
 0x231   : > { %v1581_v39 = vpop.f32.mrf.mxu1  ;;  %v2190_v54 = vpop.f32.mrf.mxu0  ;;  %v2371_v38 = vadd.f32 %v4770_v51, %v2300_v45 }
 0x232   : > { %3391 = vst [vmem:[%s4782_s5 + $0xb8] sm:$0xff] %v3327_v4   ;;  %v2301_v9 = vadd.f32 %v3747_v47, %v1590_v52  ;;  %v1582_v19 = vadd.f32 %v1581_v39, %v5066_v14  ;;  %v3322_v60 = vpack.c.bf16 %v2430_v41, %v2429_v24  ;;  %v2369_v40 = vadd.f32 %v4770_v51, %v2298_v7  ;;  %v5073_v47 = vld [vmem:[#allocation37_spill] sm:$0xff] }
 0x233   : > { %v3670_v6 = vpop.f32.mrf.mxu1  ;;  %v3750_v26 = vpop.f32.mrf.mxu0  ;;  %v2435_v37 = vmax.f32 %v2371_v38, 0.0  ;;  %v5074_v38 = vld [vmem:[#allocation38_spill] sm:$0xff] }
 0x234   : > { %v2372_v11 = vadd.f32 %v4770_v51, %v2301_v9  ;;  %v2299_v57 = vadd.f32 %v2190_v54, %v1582_v19  ;;  %v1603_v49 = vadd.f32 %v3670_v6, %v5067_v35  ;;  %3390 = vst [vmem:[%s4782_s5 + $0xb0] sm:$0xff] %v3322_v60   ;;  %v2433_v53 = vmax.f32 %v2369_v40, 0.0  ;;  %v5075_v6 = vld [vmem:[#allocation39_spill] sm:$0xff] }
 0x235   : > { %v1594_v16 = vpop.f32.mrf.mxu1  ;;  %v2203_v31 = vpop.f32.mrf.mxu0 }
 0x236   : > { %v2436_v13 = vmax.f32 %v2372_v11, 0.0  ;;  %v2370_v28 = vadd.f32 %v4770_v51, %v2299_v57  ;;  %v1595_v42 = vadd.f32 %v1594_v16, %v5068_v59  ;;  %v2304_v62 = vadd.f32 %v3750_v26, %v1603_v49 }
 0x237   : > { %v3671_v15 = vpop.f32.mrf.mxu1  ;;  %v3751_v17 = vpop.f32.mrf.mxu0 }
 0x238   : > { %v3337_v61 = vpack.c.bf16 %v2436_v13, %v2435_v37  ;;  %v2434_v30 = vmax.f32 %v2370_v28, 0.0  ;;  %v2302_v8 = vadd.f32 %v2203_v31, %v1595_v42  ;;  %v1606_v18 = vadd.f32 %v3671_v15, %v5069_v44  ;;  %v5076_v37 = vld [vmem:[#allocation40_spill] sm:$0xff] }
 0x239   : > { %v1597_v55 = vpop.f32.mrf.mxu1  ;;  %v2206_v33 = vpop.f32.mrf.mxu0  ;;  %v2375_v46 = vadd.f32 %v4770_v51, %v2304_v62 }
 0x23a   : > { %3393 = vst [vmem:[%s4782_s5 + $0xc8] sm:$0xff] %v3337_v61   ;;  %v3332_v29 = vpack.c.bf16 %v2434_v30, %v2433_v53  ;;  %v1598_v56 = vadd.f32 %v1597_v55, %v5070_v63  ;;  %v2305_v0 = vadd.f32 %v3751_v17, %v1606_v18  ;;  %v2373_v1 = vadd.f32 %v4770_v51, %v2302_v8  ;;  %v5077_v17 = vld [vmem:[#allocation41_spill] sm:$0xff]  ;;  %v5078_v55 = vld [vmem:[#allocation42_spill] sm:$0xff] }
 0x23b   : > { %v3674_v32 = vpop.f32.mrf.mxu1  ;;  %v3754_v20 = vpop.f32.mrf.mxu0  ;;  %v2439_v12 = vmax.f32 %v2375_v46, 0.0 }
 0x23c   : > { %3392 = vst [vmem:[%s4782_s5 + $0xc0] sm:$0xff] %v3332_v29   ;;  %v2303_v27 = vadd.f32 %v2206_v33, %v1598_v56  ;;  %v1619_v25 = vadd.f32 %v3674_v32, %v5071_v10  ;;  %v2376_v2 = vadd.f32 %v4770_v51, %v2305_v0  ;;  %v2437_v36 = vmax.f32 %v2373_v1, 0.0 }
 0x23d   : > { %v1610_v48 = vpop.f32.mrf.mxu1  ;;  %v2219_v21 = vpop.f32.mrf.mxu0 }
 0x23e   : > { %v2374_v3 = vadd.f32 %v4770_v51, %v2303_v27  ;;  %v2308_v34 = vadd.f32 %v3754_v20, %v1619_v25  ;;  %v1611_v23 = vadd.f32 %v1610_v48, %v5072_v22  ;;  %v2440_v45 = vmax.f32 %v2376_v2, 0.0 }
 0x23f   : > { %v3675_v5 = vpop.f32.mrf.mxu1  ;;  %v3755_v50 = vpop.f32.mrf.mxu0 }
 0x240   : > { %v2438_v43 = vmax.f32 %v2374_v3, 0.0  ;;  %v1622_v4 = vadd.f32 %v3675_v5, %v5073_v47  ;;  %v3347_v7 = vpack.c.bf16 %v2440_v45, %v2439_v12  ;;  %v2306_v58 = vadd.f32 %v2219_v21, %v1611_v23 }
 0x241   : > { %v1613_v52 = vpop.f32.mrf.mxu1  ;;  %v2222_v24 = vpop.f32.mrf.mxu0  ;;  %v2379_v39 = vadd.f32 %v4770_v51, %v2308_v34 }
 0x242   : > { %v3342_v41 = vpack.c.bf16 %v2438_v43, %v2437_v36  ;;  %v2309_v54 = vadd.f32 %v3755_v50, %v1622_v4  ;;  %3395 = vst [vmem:[%s4782_s5 + $0xd8] sm:$0xff] %v3347_v7   ;;  %v1614_v9 = vadd.f32 %v1613_v52, %v5074_v38  ;;  %v2377_v40 = vadd.f32 %v4770_v51, %v2306_v58 }
 0x243   : > { %v3678_v14 = vpop.f32.mrf.mxu1  ;;  %v3758_v19 = vpop.f32.mrf.mxu0  ;;  %v2443_v49 = vmax.f32 %v2379_v39, 0.0 }
 0x244   : > { %3394 = vst [vmem:[%s4782_s5 + $0xd0] sm:$0xff] %v3342_v41   ;;  %v2380_v60 = vadd.f32 %v4770_v51, %v2309_v54  ;;  %v1635_v26 = vadd.f32 %v3678_v14, %v5075_v6  ;;  %v2307_v11 = vadd.f32 %v2222_v24, %v1614_v9  ;;  %v2441_v61 = vmax.f32 %v2377_v40, 0.0 }
 0x245   : > { %v1626_v57 = vpop.f32.mrf.mxu1  ;;  %v2235_v35 = vpop.f32.mrf.mxu0 }
 0x246   : > { %v2444_v16 = vmax.f32 %v2380_v60, 0.0  ;;  %v2312_v31 = vadd.f32 %v3758_v19, %v1635_v26  ;;  %v1627_v13 = vadd.f32 %v1626_v57, %v5076_v37  ;;  %v2378_v28 = vadd.f32 %v4770_v51, %v2307_v11 }
 0x247   : > { %v3679_v59 = vpop.f32.mrf.mxu1  ;;  %v3759_v42 = vpop.f32.mrf.mxu0 }
 0x248   : > { %v3357_v62 = vpack.c.bf16 %v2444_v16, %v2443_v49  ;;  %v2310_v15 = vadd.f32 %v2235_v35, %v1627_v13  ;;  %v1638_v53 = vadd.f32 %v3679_v59, %v5077_v17  ;;  %v2442_v30 = vmax.f32 %v2378_v28, 0.0 }
 0x249   : > { %v1629_v8 = vpop.f32.mrf.mxu1  ;;  %v2383_v44 = vadd.f32 %v4770_v51, %v2312_v31  ;;  %v2238_v63 = vpop.f32.mrf.mxu0 }
 0x24a   : > { %3397 = vst [vmem:[%s4782_s5 + $0xe8] sm:$0xff] %v3357_v62   ;;  %v2313_v18 = vadd.f32 %v3759_v42, %v1638_v53  ;;  %v1630_v33 = vadd.f32 %v1629_v8, %v5078_v55  ;;  %v3352_v29 = vpack.c.bf16 %v2442_v30, %v2441_v61  ;;  %v2381_v56 = vadd.f32 %v4770_v51, %v2310_v15 }
 0x24b   : > { %v2447_v32 = vmax.f32 %v2383_v44, 0.0 }
 0x24c   : > { %v2384_v46 = vadd.f32 %v4770_v51, %v2313_v18  ;;  %v2311_v0 = vadd.f32 %v2238_v63, %v1630_v33  ;;  %3396 = vst [vmem:[%s4782_s5 + $0xe0] sm:$0xff] %v3352_v29   ;;  %v2445_v27 = vmax.f32 %v2381_v56, 0.0 }
 0x24e   : > { %v2448_v20 = vmax.f32 %v2384_v46, 0.0  ;;  %v2382_v1 = vadd.f32 %v4770_v51, %v2311_v0 }
 0x250   : > { %v3367_v10 = vpack.c.bf16 %v2448_v20, %v2447_v32  ;;  %v2446_v25 = vmax.f32 %v2382_v1, 0.0 }
 0x252   : > { %3399 = vst [vmem:[%s4782_s5 + $0xf8] sm:$0xff] %v3367_v10   ;;  %v3362_v2 = vpack.c.bf16 %v2446_v25, %v2445_v27 }
 0x254   : > { %3398 = vst [vmem:[%s4782_s5 + $0xf0] sm:$0xff] %v3362_v2  }
 0x255   : > { %4162 = shalt.err (!%p4159_p10)
}
 0x256   : > { %s4163_s10 = scalar_lea.hbm %s4936_s18, 4096  ;;  %s4167_s8 = scalar_lea.hbm %s4990_s7, 8192 }
 0x257   : > { %p4164_p11 = scmp.ne.s32.totalorder %s4936_s18, %s4163_s10  ;;  %p4168_p5 = scmp.lt.s32.totalorder %s4936_s18, %s4990_s7 }
 0x258   : > { %p4169_p12 = scmp.lt.s32.totalorder %s4167_s8, %s4163_s10 }
 0x259   : > { %p4165_p1 = pnand %p4164_p11, %p5079_p2 }
 0x25a   : > { %p4170_p0 = por %p4169_p12, %p4168_p5 }
 0x25b   : > { %p4166_p4 = pneg %p4165_p1 }
 0x25d   : > { %p4171_p13 = pnand %p4170_p0, %p4166_p4 }
 0x25f   : > { %4174 = shalt.err (!%p4171_p13)
}
 0x260   : > { %s4236_s11 = smov 64   ;;  %s4237_s3 = smov 4  }
 0x261   : > { %3794 = dma.vmem_to_hbm [thread:$0]  (%p5079_p2), %s4938_s1, 4096, %s4936_s18, %s2770_s9, %s4236_s11, %s4236_s11, %s4237_s3  }
 0x262 PF: > { %s5080_s23 = sld [smem:[#allocation22_spill]]  ;;  %s2798_s19 = sand.u32 1, %s4213_s24  }
 0x263   : > { %s5081_s12 = sld [smem:[#allocation19_spill]]  ;;  %s2799_s5 = scalar_lea.sflag [#allocation4], %s2798_s19 }
 0x268   : > { %p5082_p7 = scmp.ne.s32.totalorder %s5080_s23, 0 }
 0x269   : > { %p5083_p3 = scmp.ge.s32.totalorder %s5081_s12, 2 }
 0x26b   : > { %p3817_p6 = pnand %p5083_p3, %p5082_p7 }
 0x26d   : > { %p3818_p8 = pneg %p3817_p6 }
 0x26f   : > { %4208 = dma.done.wait (%p3818_p8), %s2799_s5, 4096  }
 0x270   : > { %4210 = vsyncadd (%p3818_p8), %s2799_s5, 4294963200  ;;  %s5084_s27 = sld [smem:[#allocation20_spill]]  ;;  %s5086_s24 = smov %s4217_s25 }
 0x271   : > { %s5085_s14 = sld [smem:[#allocation21_spill]]  ;;  %s5087_s25 = smov %s4221_s26 }
 0x276   : > { %p25_p9 = scmp.ge.s32.totalorder %s5084_s27, 4  }
 0x277   : > { %s5088_s26 = smov %s5085_s14 }
 0x278   :  { %27 = sbr.rel (!%p25_p9) target bundleno = 14 (0xe), region = 129 }
 0x27d   :  { %2804 = vsyncpa [#allocation3], 1 }
 0x27e   :  { %2806 = vsyncpa [#allocation3 + $0x1], 1 }
 0x27f   :  { %2807 = vsyncpa [#allocation6], 1 }
 0x280   :  { %2809 = vsyncpa [#allocation6 + $0x1], 1 }
 0x281   :  { %2810 = vsyncpa [#allocation9], 1 }
 0x282   :  { %2811 = vsyncpa [#allocation12], 1 }
 0x283   :  { %2812 = vsyncpa [#allocation4], 1 }
 0x284   :  { %2814 = vsyncpa [#allocation4 + $0x1], 1 }

</bundles_post_ra>
